<compile_context>
chip_gen: v6e
topology: v6e:2x2x1
jax: 0.10.0
libtpu: 0.0.40
codegen_flags: <defaults>
</compile_context>

<pallas_src>
import jax
import jax.numpy as jnp
import numpy as np
from jax import lax
from jax.experimental import pallas as pl
from jax.experimental.pallas import tpu as pltpu


def _round_up(x, m):
    return ((x + m - 1) // m) * m


def _qrnd_predictor_kernel(s_ref, a_ref, w0s_ref, w0a_ref, b0_ref, w1_ref,
                           b1_ref, out_ref):
    # s_ref: (TB, S)   a_ref: (TB, A)
    # w0s_ref: (S, H)  w0a_ref: (A, H)  b0_ref: (1, H)  w1_ref: (1, H)
    # b1_ref: (1, 1)   out_ref: (TB, 1)
    h = (jnp.dot(s_ref[...], w0s_ref[...],
                 preferred_element_type=jnp.float32,
                 precision=lax.Precision.HIGHEST)
         + jnp.dot(a_ref[...], w0a_ref[...],
                   preferred_element_type=jnp.float32,
                   precision=lax.Precision.HIGHEST)
         + b0_ref[...])
    # ELU(alpha=1.0), overflow-safe formulation (matches PyTorch ELU).
    h = jnp.where(h > 0, h, jnp.exp(jnp.minimum(h, 0.0)) - 1.0)
    # Second linear has a single output column: VPU mul + keepdims lane reduce
    # (no second MXU pass), then scalar bias and tanh on the EUP.
    o = jnp.sum(h * w1_ref[...], axis=-1, keepdims=True) + b1_ref[...]   # (TB, 1)
    out_ref[...] = jnp.tanh(o).astype(out_ref.dtype)


def qrnd_predictor_forward(state, action, params, *, block_rows=2048):
    """Pallas implementation of QRNDModelBullet.forward(state, action)."""
    w0, b0, w1, b1 = params
    B, S = state.shape
    A = action.shape[1]
    H = w0.shape[1]

    state = state.astype(jnp.float32)
    action = action.astype(jnp.float32)

    # Batch tile: multiple of 128 so (TB, S)/(TB, A) blocks satisfy the sublane rule
    # and per-step work amortizes the fixed grid-step overhead.
    TB = min(_round_up(block_rows, 128), _round_up(max(B, 1), 128))
    B_pad = _round_up(B, TB)
    G = B_pad // TB
    if B_pad != B:
        state = jnp.pad(state, ((0, B_pad - B), (0, 0)))
        action = jnp.pad(action, ((0, B_pad - B), (0, 0)))

    w0s = w0[:S].astype(jnp.float32)              # (S, H)
    w0a = w0[S:].astype(jnp.float32)              # (A, H)
    b0_row = b0.reshape(1, H).astype(jnp.float32)
    w1_row = w1.reshape(1, H).astype(jnp.float32)
    b1_tile = b1.reshape(1, 1).astype(jnp.float32)

    out = pl.pallas_call(
        _qrnd_predictor_kernel,
        out_shape=jax.ShapeDtypeStruct((B_pad, 1), jnp.float32),
        grid_spec=pltpu.PrefetchScalarGridSpec(
            num_scalar_prefetch=0,
            grid=(G,),
            in_specs=[
                pl.BlockSpec((TB, S), lambda i: (i, 0)),    # state tile (streamed)
                pl.BlockSpec((TB, A), lambda i: (i, 0)),    # action tile (streamed)
                pl.BlockSpec((S, H), lambda i: (0, 0)),     # W0[:S], VMEM-resident
                pl.BlockSpec((A, H), lambda i: (0, 0)),     # W0[S:], VMEM-resident
                pl.BlockSpec((1, H), lambda i: (0, 0)),     # b0 row, resident
                pl.BlockSpec((1, H), lambda i: (0, 0)),     # w1 row, resident
                pl.BlockSpec((1, 1), lambda i: (0, 0)),     # b1 scalar tile
            ],
            out_specs=pl.BlockSpec((TB, 1), lambda i: (i, 0)),
        ),
        compiler_params=pltpu.CompilerParams(
            dimension_semantics=("parallel",),   # 2x on v7x dual-TC; free elsewhere
        ),
    )(state, action, w0s, w0a, b0_row, w1_row, b1_tile)

    return out[:B]


def init_params(key, state_dim, action_dim, hidden):
    """Deterministic init matching QRNDModelBullet.model:
       xavier_uniform_(gain=1) weights, zero biases."""
    d_in = state_dim + action_dim
    k0, k1 = jax.random.split(key)

    def xavier_uniform(k, fan_in, fan_out, shape):
        bound = np.sqrt(6.0 / (fan_in + fan_out))
        return jax.random.uniform(k, shape, jnp.float32, -bound, bound)

    w0 = xavier_uniform(k0, d_in, hidden, (d_in, hidden))   # stored (in, out)
    b0 = jnp.zeros((hidden,), jnp.float32)
    w1 = xavier_uniform(k1, hidden, 1, (hidden,))           # second layer as a vector
    b1 = jnp.zeros((1,), jnp.float32)
    return (w0, b0, w1, b1)


def reference_forward(state, action, params):
    """Pure-JAX reference for the correctness check."""
    w0, b0, w1, b1 = params
    x = jnp.concatenate([state, action], axis=1)
    h = jnp.dot(x, w0, precision=lax.Precision.HIGHEST) + b0
    h = jnp.where(h > 0, h, jnp.exp(jnp.minimum(h, 0.0)) - 1.0)
    return jnp.tanh(jnp.dot(h, w1.reshape(-1, 1),
                            precision=lax.Precision.HIGHEST) + b1)


if __name__ == "__main__":
    # Shapes consistent with the module: state_dim=16, action_dim=8,
    # config.fm_h = "64,32" -> predictor hidden = fm_h[1] = 32.
    state_dim, action_dim, hidden, batch = 16, 8, 32, 8

    key = jax.random.PRNGKey(0)
    k_s, k_a, k_p = jax.random.split(key, 3)
    state = jax.random.normal(k_s, (batch, state_dim), jnp.float32)
    action = jax.random.normal(k_a, (batch, action_dim), jnp.float32)
    params = init_params(k_p, state_dim, action_dim, hidden)

    fwd = jax.jit(lambda s, a: qrnd_predictor_forward(s, a, params))
    out = jax.block_until_ready(fwd(state, action))

    ref = reference_forward(state, action, params)
    assert out.shape == (batch, 1)
    np.testing.assert_allclose(np.asarray(out), np.asarray(ref), rtol=1e-4, atol=1e-4)

    print("KERNEL_OK")
</pallas_src>

<mosaic_0001>
module attributes {stable_mosaic.version = 11 : i64} {
  func.func @_qrnd_predictor_kernel(%arg0: i32, %arg1: memref<128x16xf32, #tpu.memory_space<vmem>>, %arg2: memref<128x8xf32, #tpu.memory_space<vmem>>, %arg3: memref<16x32xf32, #tpu.memory_space<vmem>>, %arg4: memref<8x32xf32, #tpu.memory_space<vmem>>, %arg5: memref<1x32xf32, #tpu.memory_space<vmem>>, %arg6: memref<1x32xf32, #tpu.memory_space<vmem>>, %arg7: memref<1x1xf32, #tpu.memory_space<vmem>>, %arg8: memref<128x1xf32, #tpu.memory_space<vmem>>) attributes {dimension_semantics = [#tpu.dimension_semantics<parallel>], iteration_bounds = array<i64: 1>, scalar_prefetch = 0 : i64, scratch_operands = 0 : i64, tpu.core_type = #tpu.core_type<tc>, window_params = [{transform_indices = @transform_0, window_bounds = array<i64: 128, 16>}, {transform_indices = @transform_1, window_bounds = array<i64: 128, 8>}, {pipeline_mode = #tpu.pipeline_mode<synchronous>, transform_indices = @transform_2, window_bounds = array<i64: 16, 32>}, {pipeline_mode = #tpu.pipeline_mode<synchronous>, transform_indices = @transform_3, window_bounds = array<i64: 8, 32>}, {pipeline_mode = #tpu.pipeline_mode<synchronous>, transform_indices = @transform_4, window_bounds = array<i64: 1, 32>}, {pipeline_mode = #tpu.pipeline_mode<synchronous>, transform_indices = @transform_5, window_bounds = array<i64: 1, 32>}, {pipeline_mode = #tpu.pipeline_mode<synchronous>, transform_indices = @transform_6, window_bounds = array<i64: 1, 1>}, {transform_indices = @transform_7, window_bounds = array<i64: 128, 1>}]} {
    %c0 = arith.constant 0 : index
    %c0_0 = arith.constant 0 : index
    %0 = vector.load %arg1[%c0, %c0_0] : memref<128x16xf32, #tpu.memory_space<vmem>>, vector<128x16xf32>
    %c0_1 = arith.constant 0 : index
    %c0_2 = arith.constant 0 : index
    %1 = vector.load %arg3[%c0_1, %c0_2] : memref<16x32xf32, #tpu.memory_space<vmem>>, vector<16x32xf32>
    %cst = arith.constant dense<0.000000e+00> : vector<128x32xf32>
    %2 = tpu.matmul %0, %1, %cst {dimension_numbers = #tpu.dot_dimension_numbers<[1], [0], [0], [1], [0, 0, 1, 1], [], []>, precision = #tpu.contract_precision<fp32>} : vector<128x16xf32>, vector<16x32xf32>, vector<128x32xf32> -> vector<128x32xf32>
    %c0_3 = arith.constant 0 : index
    %c0_4 = arith.constant 0 : index
    %3 = vector.load %arg2[%c0_3, %c0_4] : memref<128x8xf32, #tpu.memory_space<vmem>>, vector<128x8xf32>
    %c0_5 = arith.constant 0 : index
    %c0_6 = arith.constant 0 : index
    %4 = vector.load %arg4[%c0_5, %c0_6] : memref<8x32xf32, #tpu.memory_space<vmem>>, vector<8x32xf32>
    %cst_7 = arith.constant dense<0.000000e+00> : vector<128x32xf32>
    %5 = tpu.matmul %3, %4, %cst_7 {dimension_numbers = #tpu.dot_dimension_numbers<[1], [0], [0], [1], [0, 0, 1, 1], [], []>, precision = #tpu.contract_precision<fp32>} : vector<128x8xf32>, vector<8x32xf32>, vector<128x32xf32> -> vector<128x32xf32>
    %6 = arith.addf %2, %5 : vector<128x32xf32>
    %c0_8 = arith.constant 0 : index
    %c0_9 = arith.constant 0 : index
    %7 = vector.load %arg5[%c0_8, %c0_9] : memref<1x32xf32, #tpu.memory_space<vmem>>, vector<1x32xf32>
    %8 = vector.broadcast %7 : vector<1x32xf32> to vector<128x32xf32>
    %9 = arith.addf %6, %8 : vector<128x32xf32>
    %cst_10 = arith.constant 0.000000e+00 : f32
    %10 = vector.broadcast %cst_10 : f32 to vector<128x32xf32>
    %11 = arith.cmpf ogt, %9, %10 : vector<128x32xf32>
    %cst_11 = arith.constant 0.000000e+00 : f32
    %12 = vector.broadcast %cst_11 : f32 to vector<128x32xf32>
    %13 = arith.minimumf %9, %12 : vector<128x32xf32>
    %14 = math.exp %13 : vector<128x32xf32>
    %cst_12 = arith.constant 1.000000e+00 : f32
    %15 = vector.broadcast %cst_12 : f32 to vector<128x32xf32>
    %16 = arith.subf %14, %15 : vector<128x32xf32>
    %17 = arith.select %11, %9, %16 : vector<128x32xi1>, vector<128x32xf32>
    %c0_13 = arith.constant 0 : index
    %c0_14 = arith.constant 0 : index
    %18 = vector.load %arg6[%c0_13, %c0_14] : memref<1x32xf32, #tpu.memory_space<vmem>>, vector<1x32xf32>
    %19 = vector.broadcast %18 : vector<1x32xf32> to vector<128x32xf32>
    %20 = arith.mulf %17, %19 : vector<128x32xf32>
    %cst_15 = arith.constant dense<0.000000e+00> : vector<128xf32>
    %21 = vector.multi_reduction <add>, %20, %cst_15 [1] : vector<128x32xf32> to vector<128xf32>
    %22 = vector.shape_cast %21 : vector<128xf32> to vector<128x1xf32>
    %c0_16 = arith.constant 0 : index
    %c0_17 = arith.constant 0 : index
    %23 = vector.load %arg7[%c0_16, %c0_17] : memref<1x1xf32, #tpu.memory_space<vmem>>, vector<1x1xf32>
    %24 = vector.broadcast %23 : vector<1x1xf32> to vector<128x1xf32>
    %25 = arith.addf %22, %24 : vector<128x1xf32>
    %26 = math.tanh %25 : vector<128x1xf32>
    %c0_18 = arith.constant 0 : index
    %c0_19 = arith.constant 0 : index
    %27 = vector.load %arg8[%c0_18, %c0_19] : memref<128x1xf32, #tpu.memory_space<vmem>>, vector<128x1xf32>
    tpu.vector_store %arg8[%c0_18, %c0_19], %26 {strides = array<i32>} : memref<128x1xf32, #tpu.memory_space<vmem>>, vector<128x1xf32>,
    return
  }
  func.func @transform_0(%arg0: i32) -> (i32, i32) {
    %c0_i32 = arith.constant 0 : i32
    %c0_i32_0 = arith.constant 0 : i32
    return %arg0, %c0_i32 : i32, i32
  }
  func.func @transform_1(%arg0: i32) -> (i32, i32) {
    %c0_i32 = arith.constant 0 : i32
    %c0_i32_0 = arith.constant 0 : i32
    return %arg0, %c0_i32 : i32, i32
  }
  func.func @transform_2(%arg0: i32) -> (i32, i32) {
    %c0_i32 = arith.constant 0 : i32
    %c0_i32_0 = arith.constant 0 : i32
    %c0_i32_1 = arith.constant 0 : i32
    return %c0_i32, %c0_i32_0 : i32, i32
  }
  func.func @transform_3(%arg0: i32) -> (i32, i32) {
    %c0_i32 = arith.constant 0 : i32
    %c0_i32_0 = arith.constant 0 : i32
    %c0_i32_1 = arith.constant 0 : i32
    return %c0_i32, %c0_i32_0 : i32, i32
  }
  func.func @transform_4(%arg0: i32) -> (i32, i32) {
    %c0_i32 = arith.constant 0 : i32
    %c0_i32_0 = arith.constant 0 : i32
    %c0_i32_1 = arith.constant 0 : i32
    return %c0_i32, %c0_i32_0 : i32, i32
  }
  func.func @transform_5(%arg0: i32) -> (i32, i32) {
    %c0_i32 = arith.constant 0 : i32
    %c0_i32_0 = arith.constant 0 : i32
    %c0_i32_1 = arith.constant 0 : i32
    return %c0_i32, %c0_i32_0 : i32, i32
  }
  func.func @transform_6(%arg0: i32) -> (i32, i32) {
    %c0_i32 = arith.constant 0 : i32
    %c0_i32_0 = arith.constant 0 : i32
    %c0_i32_1 = arith.constant 0 : i32
    return %c0_i32, %c0_i32_0 : i32, i32
  }
  func.func @transform_7(%arg0: i32) -> (i32, i32) {
    %c0_i32 = arith.constant 0 : i32
    %c0_i32_0 = arith.constant 0 : i32
    return %arg0, %c0_i32 : i32, i32
  }
}

</mosaic_0001>

<bundles_post_ra>
// kernel: _lambda_.1
= control target key start
LH: loop header
LB: loop body
LE: loop exit
PB: predicated region body
PF: predicated region fallthrough
CT: control target
= control target key end

     0   :  { %vm63_vm0 = vcmask 64512   ;;  %vm1203_vm1 = vcmask 130048   ;;  %vm2498_vm2 = vcmask 261120   ;;  %s4348_s3 = inlined_call_operand.vmem [shape: f32[8,32], index: 3, kind: input, shape index: {}]   ;;  %s4349_s1 = inlined_call_operand.vmem [shape: f32[128,8], index: 1, kind: input, shape index: {}]   ;;  %s4350_s2 = inlined_call_operand.vmem [shape: f32[16,32], index: 2, kind: input, shape index: {}]   ;;  %s4351_s0 = inlined_call_operand.vmem [shape: f32[128,16], index: 0, kind: input, shape index: {}]   ;;  %s4352_s6 = inlined_call_operand.<no memory space> [shape: f32[1,1], index: 6, kind: input, shape index: {}]   ;;  %s4353_s4 = inlined_call_operand.vmem [shape: f32[1,32], index: 4, kind: input, shape index: {}]   ;;  %s4354_s5 = inlined_call_operand.vmem [shape: f32[1,32], index: 5, kind: input, shape index: {}]   ;;  %s4355_s7 = inlined_call_operand.vmem [shape: f32[128,1], index: 7, kind: output, shape index: {}]  }
   0x1   :  { %v62_v0 = vld [vmem:[%s4348_s3] sm:$0xff]  ;;  %v47_v2 = vld [vmem:[%s4349_s1 + $0x8] sm:$0xff]  ;;  %v48_v6 = vld [vmem:[%s4349_s1 + $0x10] sm:$0xff] }
   0x2   :  { %v46_v1 = vld [vmem:[%s4349_s1] sm:$0xff]  ;;  %v3273_v3 = vand.u32 4294901760, %v62_v0  ;;  %v68_v5 = vsel %vm63_vm0, %v47_v2, 0  ;;  %v49_v7 = vld [vmem:[%s4349_s1 + $0x18] sm:$0xff]  ;;  %v71_v11 = vsel %vm63_vm0, %v48_v6, 0  ;;  %v51_v13 = vld [vmem:[%s4349_s1 + $0x28] sm:$0xff] }
   0x3   :  { %v65_v4 = vsel %vm63_vm0, %v46_v1, 0  ;;  %v50_v8 = vld [vmem:[%s4349_s1 + $0x20] sm:$0xff]  ;;  %v3288_v10 = vand.u32 4294901760, %v68_v5  ;;  %v74_v12 = vsel %vm63_vm0, %v49_v7, 0  ;;  %v3297_v15 = vand.u32 4294901760, %v71_v11  ;;  %v52_v18 = vld [vmem:[%s4349_s1 + $0x30] sm:$0xff] }
   0x4   :  { %v3286_v9 = vand.u32 4294901760, %v65_v4  ;;  %2836 = vmatprep.subr.mxu0 %v3273_v3  ;;  %v370_v14 = vsub.f32 %v62_v0, %v3273_v3  ;;  %v3299_v16 = vand.u32 4294901760, %v74_v12  ;;  %v77_v17 = vsel %vm63_vm0, %v50_v8, 0  ;;  %v53_v39 = vld [vmem:[%s4349_s1 + $0x38] sm:$0xff]  ;;  %v54_v44 = vld [vmem:[%s4349_s1 + $0x40] sm:$0xff]  ;;  %v55_v49 = vld [vmem:[%s4349_s1 + $0x48] sm:$0xff] }
   0x5   :  { %2837 = vmatpush3.msra.mxu0 %v3273_v3  ;;  %v3311_v20 = vsub.f32 %v68_v5, %v3288_v10  ;;  %v3313_v21 = vand.u32 4294901760, %v77_v17  ;;  %v80_v22 = vsel %vm63_vm0, %v51_v13, 0  ;;  %v3319_v24 = vsub.f32 %v71_v11, %v3297_v15  ;;  %v56_v50 = vld [vmem:[%s4349_s1 + $0x50] sm:$0xff]  ;;  %v57_v55 = vld [vmem:[%s4349_s1 + $0x58] sm:$0xff]  ;;  %v58_v60 = vld [vmem:[%s4349_s1 + $0x60] sm:$0xff] }
   0x6   :  { %v3307_v19 = vsub.f32 %v65_v4, %v3286_v9  ;;  %2864 = vmatprep.mubr.f32.mxu1 %v3286_v9  ;;  %v3316_v23 = vand.u32 4294901760, %v370_v14  ;;  %2888 = vmatprep.subr.mxu0 %v370_v14  ;;  %v3322_v25 = vsub.f32 %v74_v12, %v3299_v16  ;;  %v3324_v26 = vand.u32 4294901760, %v80_v22  ;;  %v59_v61 = vld [vmem:[%s4349_s1 + $0x68] sm:$0xff]  ;;  %v60_v13 = vld [vmem:[%s4349_s1 + $0x70] sm:$0xff] }
   0x7   :  { %v190_v28 = vand.u32 4294901760, %v3311_v20  ;;  %v3329_v29 = vsub.f32 %v77_v17, %v3313_v21  ;;  %v83_v30 = vsel %vm63_vm0, %v52_v18, 0  ;;  %v200_v32 = vand.u32 4294901760, %v3319_v24 }
   0x8   :  { %v180_v27 = vand.u32 4294901760, %v3307_v19  ;;  %v372_v31 = vsub.f32 %v370_v14, %v3316_v23  ;;  %v210_v33 = vand.u32 4294901760, %v3322_v25  ;;  %v3336_v34 = vsub.f32 %v80_v22, %v3324_v26 }
   0x9   :  { %v191_v36 = vsub.f32 %v3311_v20, %v190_v28  ;;  %v220_v37 = vand.u32 4294901760, %v3329_v29  ;;  %v3345_v38 = vand.u32 4294901760, %v83_v30  ;;  %v201_v41 = vsub.f32 %v3319_v24, %v200_v32 }
   0xa   :  { %v181_v35 = vsub.f32 %v3307_v19, %v180_v27  ;;  %v373_v40 = vand.u32 4294901760, %v372_v31  ;;  %v211_v42 = vsub.f32 %v3322_v25, %v210_v33  ;;  %v230_v43 = vand.u32 4294901760, %v3336_v34 }
   0xb   :  { %v192_v46 = vand.u32 4294901760, %v191_v36  ;;  %v221_v47 = vsub.f32 %v3329_v29, %v220_v37  ;;  %v3364_v48 = vsub.f32 %v83_v30, %v3345_v38  ;;  %v202_v51 = vand.u32 4294901760, %v201_v41 }
   0xc   :  { %v182_v45 = vand.u32 4294901760, %v181_v35  ;;  %2862 = vmatprep.subr.mxu1 %v373_v40  ;;  %v212_v52 = vand.u32 4294901760, %v211_v42  ;;  %v231_v53 = vsub.f32 %v3336_v34, %v230_v43  ;;  %v86_v54 = vsel %vm63_vm0, %v53_v39, 0 }
   0xd   :  { %2863 = vmatpush3.msra.mxu1 %v373_v40  ;;  %v222_v56 = vand.u32 4294901760, %v221_v47  ;;  %v240_v57 = vand.u32 4294901760, %v3364_v48  ;;  %v3380_v58 = vand.u32 4294901760, %v86_v54  ;;  %v89_v59 = vsel %vm63_vm0, %v54_v44, 0  ;;  %v61_v47 = vld [vmem:[%s4349_s1 + $0x78] sm:$0xff] }
   0xe   :  { %2838 = vmatprep.mubr.f32.mxu0 %v182_v45  ;;  %2865 = vmatmul.mubr.f32.vlgmr.msra.gmra.mxu1 %v3288_v10  ;;  %v232_v62 = vand.u32 4294901760, %v231_v53  ;;  %v3390_v63 = vand.u32 4294901760, %v89_v59  ;;  %v92_v0 = vsel %vm63_vm0, %v55_v49, 0  ;;  %v95_v1 = vsel %vm63_vm0, %v56_v50, 0 }
   0xf   :  { %2839 = vmatmul.mubr.f32.vlgmr.msra.gmra.mxu0 %v192_v46  ;;  %2914 = vmatprep.subr.mxu1 %v3273_v3  ;;  %v241_v2 = vsub.f32 %v3364_v48, %v240_v57  ;;  %v3399_v4 = vsub.f32 %v86_v54, %v3380_v58  ;;  %v3401_v5 = vand.u32 4294901760, %v92_v0  ;;  %v3403_v6 = vand.u32 4294901760, %v95_v1 }
  0x10   :  { %2889 = vmatpush3.msra.mxu0 %v370_v14  ;;  %2915 = vmatpush3.msra.mxu1 %v3273_v3  ;;  %v3407_v7 = vsub.f32 %v89_v59, %v3390_v63  ;;  %v98_v8 = vsel %vm63_vm0, %v57_v55, 0  ;;  %v101_v11 = vsel %vm63_vm0, %v58_v60, 0  ;;  %v104_v12 = vsel %vm63_vm0, %v59_v61, 0 }
  0x11   :  { %2841 = vmatprep.mubr.f32.mxu0 %v202_v51  ;;  %2867 = vmatprep.mubr.f32.mxu1 %v3297_v15  ;;  %v242_v14 = vand.u32 4294901760, %v241_v2  ;;  %v250_v17 = vand.u32 4294901760, %v3399_v4  ;;  %v3418_v18 = vsub.f32 %v92_v0, %v3401_v5  ;;  %v3421_v22 = vsub.f32 %v95_v1, %v3403_v6 }
  0x12   :  { %2940 = vmatprep.subr.mxu0 %v3316_v23  ;;  %2868 = vmatmul.mubr.f32.gmra.mxu1 %v3299_v16  ;;  %v260_v30 = vand.u32 4294901760, %v3407_v7  ;;  %v3426_v31 = vand.u32 4294901760, %v98_v8  ;;  %v3428_v35 = vand.u32 4294901760, %v101_v11  ;;  %v3430_v36 = vand.u32 4294901760, %v104_v12 }
  0x13   :  { %2842 = vmatmul.mubr.f32.gmra.mxu0 %v212_v52  ;;  %2870 = vmatprep.mubr.f32.mxu1 %v3313_v21  ;;  %v251_v39 = vsub.f32 %v3399_v4, %v250_v17  ;;  %v270_v40 = vand.u32 4294901760, %v3418_v18  ;;  %v280_v41 = vand.u32 4294901760, %v3421_v22  ;;  %v107_v42 = vsel %vm63_vm0, %v60_v13, 0 }
  0x14   :  { %2844 = vmatprep.mubr.f32.mxu0 %v222_v56  ;;  %v261_v44 = vsub.f32 %v3407_v7, %v260_v30  ;;  %v3443_v45 = vsub.f32 %v98_v8, %v3426_v31  ;;  %v3446_v46 = vsub.f32 %v101_v11, %v3428_v35  ;;  %2966 = vmatprep.subr.mxu1 %v3273_v3  ;;  %v3455_v50 = vand.u32 4294901760, %v107_v42  ;;  %v45_v8 = vld [vmem:[%s4350_s2 + $0x8] sm:$0xff] }
  0x15   :  { %v3453_v49 = vsub.f32 %v104_v12, %v3430_v36  ;;  %v252_v51 = vand.u32 4294901760, %v251_v39  ;;  %v271_v52 = vsub.f32 %v3418_v18, %v270_v40  ;;  %v281_v53 = vsub.f32 %v3421_v22, %v280_v41 }
  0x16   :  { %2871 = vmatmul.mubr.f32.gmra.mxu1 %v3324_v26  ;;  %v290_v54 = vand.u32 4294901760, %v3443_v45  ;;  %v262_v55 = vand.u32 4294901760, %v261_v44  ;;  %v300_v56 = vand.u32 4294901760, %v3446_v46  ;;  %v3468_v59 = vsub.f32 %v107_v42, %v3455_v50 }
  0x17   :  { %2845 = vmatmul.mubr.f32.gmra.mxu0 %v232_v62  ;;  %2873 = vmatprep.mubr.f32.mxu1 %v3345_v38  ;;  %v110_v60 = vsel %vm63_vm0, %v61_v47, 0  ;;  %v272_v62 = vand.u32 4294901760, %v271_v52  ;;  %v310_v1 = vand.u32 4294901760, %v3453_v49  ;;  %v282_v11 = vand.u32 4294901760, %v281_v53 }
  0x18   :  { %2847 = vmatprep.mubr.f32.mxu0 %v242_v14  ;;  %v3471_v61 = vand.u32 4294901760, %v110_v60  ;;  %v291_v0 = vsub.f32 %v3443_v45, %v290_v54  ;;  %v301_v12 = vsub.f32 %v3446_v46, %v300_v56  ;;  %v320_v13 = vand.u32 4294901760, %v3468_v59 }
  0x19   :  { %v3489_v14 = vand.u32 4294901760, %v45_v8  ;;  %v311_v42 = vsub.f32 %v3453_v49, %v310_v1 }
  0x1a   :  { %2874 = vmatmul.mubr.f32.gmra.mxu1 %v3380_v58  ;;  %v3479_v2 = vsub.f32 %v110_v60, %v3471_v61  ;;  %v292_v39 = vand.u32 4294901760, %v291_v0  ;;  %v302_v47 = vand.u32 4294901760, %v301_v12  ;;  %v38_v12 = vld [vmem:[%s4351_s0 + $0x50] sm:$0xff] }
  0x1b   :  { %2848 = vmatmul.mubr.f32.gmra.mxu0 %v252_v51  ;;  %2876 = vmatprep.mubr.f32.mxu1 %v3390_v63  ;;  %v321_v51 = vsub.f32 %v3468_v59, %v320_v13  ;;  %v3501_v52 = vsub.f32 %v45_v8, %v3489_v14  ;;  %v312_v53 = vand.u32 4294901760, %v311_v42 }
  0x1c   :  { %2850 = vmatprep.mubr.f32.mxu0 %v262_v55  ;;  %v330_v44 = vand.u32 4294901760, %v3479_v2 }
  0x1d   :  { %v322_v60 = vand.u32 4294901760, %v321_v51  ;;  %v39_v51 = vld [vmem:[%s4351_s0 + $0x58] sm:$0xff] }
  0x1e   :  { %2877 = vmatmul.mubr.f32.gmra.mxu1 %v3401_v5  ;;  %v331_v55 = vsub.f32 %v3479_v2, %v330_v44 }
  0x1f   :  { %2851 = vmatmul.mubr.f32.gmra.mxu0 %v272_v62  ;;  %2879 = vmatprep.mubr.f32.mxu1 %v3403_v6  ;;  %v3507_v62 = vand.u32 4294901760, %v3501_v52 }
  0x20   :  { %2853 = vmatprep.mubr.f32.mxu0 %v282_v11  ;;  %v332_v0 = vand.u32 4294901760, %v331_v55 }
  0x21   :  { %v1511_v8 = vsub.f32 %v3501_v52, %v3507_v62 }
  0x22   :  { %2880 = vmatmul.mubr.f32.gmra.mxu1 %v3426_v31 }
  0x23   :  { %2854 = vmatmul.mubr.f32.gmra.mxu0 %v292_v39  ;;  %2882 = vmatprep.mubr.f32.mxu1 %v3428_v35  ;;  %v1512_v11 = vand.u32 4294901760, %v1511_v8  ;;  %v40_v8 = vld [vmem:[%s4351_s0 + $0x60] sm:$0xff] }
  0x24   :  { %2856 = vmatprep.mubr.f32.mxu0 %v302_v47 }
  0x26   :  { %2883 = vmatmul.mubr.f32.gmra.mxu1 %v3430_v36 }
  0x27   :  { %2857 = vmatmul.mubr.f32.gmra.mxu0 %v312_v53  ;;  %2885 = vmatprep.mubr.f32.mxu1 %v3455_v50  ;;  %v1235_v53 = vsel %vm1203_vm1, %v38_v12, 0 }
  0x28   :  { %2859 = vmatprep.mubr.f32.mxu0 %v322_v60 }
  0x2a   :  { %2886 = vmatmul.mubr.f32.gmra.mxu1 %v3471_v61 }
  0x2b   :  { %2860 = vmatmul.mubr.f32.gmra.mxu0 %v332_v0  ;;  %2916 = vmatprep.mubr.f32.mxu1 %v180_v27  ;;  %v28_v27 = vld [vmem:[%s4351_s0] sm:$0xff] }
  0x2c   :  { %2890 = vmatprep.mubr.f32.mxu0 %v3307_v19 }
  0x2e   :  { %2917 = vmatmul.mubr.f32.vlgmr.msra.gmra.mxu1 %v190_v28  ;;  %v31_v28 = vld [vmem:[%s4351_s0 + $0x18] sm:$0xff] }
  0x2f   :  { %2891 = vmatmul.mubr.f32.vlgmr.msra.gmra.mxu0 %v3311_v20  ;;  %2967 = vmatpush3.msra.mxu1 %v3273_v3  ;;  %v44_v3 = vld [vmem:[%s4350_s2] sm:$0xff] }
  0x30   :  { %2941 = vmatpush3.msra.mxu0 %v3316_v23  ;;  %2893 = vmatprep.mubr.f32.mxu0 %v3319_v24  ;;  %v3547_v19 = vand.u32 4294901760, %v44_v3 }
  0x31   :  { %2919 = vmatprep.mubr.f32.mxu1 %v200_v32  ;;  %2992 = vmatprep.subr.mxu0 %v3489_v14  ;;  %v32_v32 = vld [vmem:[%s4351_s0 + $0x20] sm:$0xff] }
  0x32   :  { %3020 = vmatprep.subr.mxu1 %v1512_v11  ;;  %2920 = vmatmul.mubr.f32.gmra.mxu1 %v210_v33  ;;  %v3556_v20 = vsub.f32 %v44_v3, %v3547_v19  ;;  %v1214_v33 = vsel %vm1203_vm1, %v31_v28, 0 }
  0x33   :  { %2894 = vmatmul.mubr.f32.gmra.mxu0 %v3322_v25  ;;  %2922 = vmatprep.mubr.f32.mxu1 %v220_v37  ;;  %v33_v37 = vld [vmem:[%s4351_s0 + $0x28] sm:$0xff] }
  0x34   :  { %2896 = vmatprep.mubr.f32.mxu0 %v3329_v29  ;;  %v3565_v23 = vand.u32 4294901760, %v3556_v20 }
  0x36   :  { %2923 = vmatmul.mubr.f32.gmra.mxu1 %v230_v43  ;;  %v1518_v24 = vsub.f32 %v3556_v20, %v3565_v23 }
  0x37   :  { %2897 = vmatmul.mubr.f32.gmra.mxu0 %v3336_v34  ;;  %2925 = vmatprep.mubr.f32.mxu1 %v240_v57 }
  0x38   :  { %2899 = vmatprep.mubr.f32.mxu0 %v3364_v48  ;;  %v1519_v25 = vand.u32 4294901760, %v1518_v24  ;;  %v1217_v48 = vsel %vm1203_vm1, %v32_v32, 0  ;;  %v42_v32 = vld [vmem:[%s4351_s0 + $0x70] sm:$0xff] }
  0x3a   :  { %2926 = vmatmul.mubr.f32.gmra.mxu1 %v250_v17  ;;  %v3646_v17 = vand.u32 4294901760, %v1217_v48 }
  0x3b   :  { %2900 = vmatmul.mubr.f32.gmra.mxu0 %v3399_v4  ;;  %2928 = vmatprep.mubr.f32.mxu1 %v260_v30 }
  0x3c   :  { %2902 = vmatprep.mubr.f32.mxu0 %v3407_v7 }
  0x3e   :  { %2929 = vmatmul.mubr.f32.gmra.mxu1 %v270_v40 }
  0x3f   :  { %2903 = vmatmul.mubr.f32.gmra.mxu0 %v3418_v18  ;;  %2931 = vmatprep.mubr.f32.mxu1 %v280_v41 }
  0x40   :  { %2905 = vmatprep.mubr.f32.mxu0 %v3421_v22  ;;  %v35_v22 = vld [vmem:[%s4351_s0 + $0x38] sm:$0xff] }
  0x42   :  { %2932 = vmatmul.mubr.f32.gmra.mxu1 %v290_v54 }
  0x43   :  { %2906 = vmatmul.mubr.f32.gmra.mxu0 %v3443_v45  ;;  %2934 = vmatprep.mubr.f32.mxu1 %v300_v56 }
  0x44   :  { %2908 = vmatprep.mubr.f32.mxu0 %v3446_v46  ;;  %v3673_v46 = vsub.f32 %v1217_v48, %v3646_v17 }
  0x46   :  { %2935 = vmatmul.mubr.f32.gmra.mxu1 %v310_v1 }
  0x47   :  { %2909 = vmatmul.mubr.f32.gmra.mxu0 %v3453_v49  ;;  %2937 = vmatprep.mubr.f32.mxu1 %v320_v13  ;;  %v1226_v49 = vsel %vm1203_vm1, %v35_v22, 0 }
  0x48   :  { %2911 = vmatprep.mubr.f32.mxu0 %v3468_v59  ;;  %v3696_v13 = vand.u32 4294901760, %v1226_v49 }
  0x4a   :  { %2938 = vmatmul.mubr.f32.gmra.mxu1 %v330_v44  ;;  %v1361_v44 = vand.u32 4294901760, %v3673_v46 }
  0x4b   :  { %2912 = vmatmul.mubr.f32.gmra.mxu0 %v3479_v2  ;;  %2968 = vmatprep.mubr.f32.mxu1 %v3286_v9 }
  0x4c   :  { %2942 = vmatprep.mubr.f32.mxu0 %v3286_v9  ;;  %v29_v9 = vld [vmem:[%s4351_s0 + $0x8] sm:$0xff] }
  0x4e   :  { %2969 = vmatmul.mubr.f32.vlgmr.msra.gmra.mxu1 %v3288_v10 }
  0x4f   :  { %2943 = vmatmul.mubr.f32.vlgmr.msra.gmra.mxu0 %v3288_v10  ;;  %3021 = vmatpush3.msra.mxu1 %v1512_v11  ;;  %v1205_v10 = vsel %vm1203_vm1, %v28_v27, 0  ;;  %v3722_v11 = vsub.f32 %v1226_v49, %v3696_v13  ;;  %v1362_v27 = vsub.f32 %v3673_v46, %v1361_v44  ;;  %v43_v49 = vld [vmem:[%s4351_s0 + $0x78] sm:$0xff] }
  0x50   :  { %2993 = vmatpush3.msra.mxu0 %v3489_v14  ;;  %2945 = vmatprep.mubr.f32.mxu0 %v3297_v15 }
  0x51   :  { %2971 = vmatprep.mubr.f32.mxu1 %v3297_v15  ;;  %2994 = vmatprep.subr.mxu0 %v3547_v19  ;;  %v1208_v15 = vsel %vm1203_vm1, %v29_v9, 0  ;;  %v3734_v9 = vand.u32 4294901760, %v1235_v53 }
  0x52   :  { %3022 = vmatprep.subr.mxu1 %v1519_v25  ;;  %2972 = vmatmul.mubr.f32.gmra.mxu1 %v3299_v16  ;;  %v3611_v29 = vand.u32 4294901760, %v1208_v15 }
  0x53   :  { %2946 = vmatmul.mubr.f32.gmra.mxu0 %v3299_v16  ;;  %2974 = vmatprep.mubr.f32.mxu1 %v3313_v21  ;;  %v30_v16 = vld [vmem:[%s4351_s0 + $0x10] sm:$0xff] }
  0x54   :  { %2948 = vmatprep.mubr.f32.mxu0 %v3313_v21  ;;  %2995 = vmatpush3.msra.mxu0 %v3547_v19  ;;  %v3606_v21 = vand.u32 4294901760, %v1205_v10  ;;  %v3635_v57 = vsub.f32 %v1208_v15, %v3611_v29  ;;  %v41_v15 = vld [vmem:[%s4351_s0 + $0x68] sm:$0xff] }
  0x55   :  { %3023 = vmatpush3.msra.mxu1 %v1519_v25  ;;  %3048 = vmatprep.subr.mxu0 %v3501_v52  ;;  %v1238_v25 = vsel %vm1203_vm1, %v39_v51, 0 }
  0x56   :  { %3076 = vmatprep.subr.mxu1 %v3489_v14  ;;  %2975 = vmatmul.mubr.f32.gmra.mxu1 %v3324_v26  ;;  %v3623_v34 = vsub.f32 %v1205_v10, %v3606_v21  ;;  %v1331_v30 = vand.u32 4294901760, %v3635_v57  ;;  %v1241_v10 = vsel %vm1203_vm1, %v40_v8, 0 }
  0x57   :  { %2949 = vmatmul.mubr.f32.gmra.mxu0 %v3324_v26  ;;  %2977 = vmatprep.mubr.f32.mxu1 %v3345_v38  ;;  %v1211_v26 = vsel %vm1203_vm1, %v30_v16, 0  ;;  %v3762_v22 = vand.u32 4294901760, %v1241_v10 }
  0x58   :  { %2951 = vmatprep.mubr.f32.mxu0 %v3345_v38  ;;  %v34_v38 = vld [vmem:[%s4351_s0 + $0x30] sm:$0xff]  ;;  %v3631_v43 = vand.u32 4294901760, %v1211_v26  ;;  %v1321_v7 = vand.u32 4294901760, %v3623_v34 }
  0x59   :  { %v1223_v4 = vsel %vm1203_vm1, %v34_v38, 0 }
  0x5a   :  { %2978 = vmatmul.mubr.f32.gmra.mxu1 %v3380_v58  ;;  %v3649_v18 = vsub.f32 %v1211_v26, %v3631_v43  ;;  %v3663_v41 = vand.u32 4294901760, %v1223_v4  ;;  %v1322_v45 = vsub.f32 %v3623_v34, %v1321_v7  ;;  %v3746_v26 = vand.u32 4294901760, %v1238_v25 }
  0x5b   :  { %2952 = vmatmul.mubr.f32.gmra.mxu0 %v3380_v58  ;;  %2980 = vmatprep.mubr.f32.mxu1 %v3390_v63  ;;  %v3637_v58 = vand.u32 4294901760, %v1214_v33 }
  0x5c   :  { %2954 = vmatprep.mubr.f32.mxu0 %v3390_v63  ;;  %v1220_v63 = vsel %vm1203_vm1, %v33_v37, 0  ;;  %v1341_v56 = vand.u32 4294901760, %v3649_v18  ;;  %v3689_v2 = vsub.f32 %v1223_v4, %v3663_v41  ;;  %v1323_v42 = vand.u32 4294901760, %v1322_v45 }
  0x5d   :  { %v3659_v40 = vsub.f32 %v1214_v33, %v3637_v58  ;;  %v1391_v37 = vand.u32 4294901760, %v3722_v11  ;;  %v3760_v4 = vsub.f32 %v1235_v53, %v3734_v9  ;;  %v1247_v45 = vsel %vm1203_vm1, %v42_v32, 0 }
  0x5e   :  { %2981 = vmatmul.mubr.f32.gmra.mxu1 %v3401_v5  ;;  %v1381_v0 = vand.u32 4294901760, %v3689_v2  ;;  %v3790_v53 = vand.u32 4294901760, %v1247_v45 }
  0x5f   :  { %2955 = vmatmul.mubr.f32.gmra.mxu0 %v3401_v5  ;;  %2983 = vmatprep.mubr.f32.mxu1 %v3403_v6  ;;  %v36_v5 = vld [vmem:[%s4351_s0 + $0x40] sm:$0xff]  ;;  %v1351_v59 = vand.u32 4294901760, %v3659_v40  ;;  %v1421_v51 = vand.u32 4294901760, %v3760_v4 }
  0x60   :  { %2957 = vmatprep.mubr.f32.mxu0 %v3403_v6  ;;  %v3661_v6 = vand.u32 4294901760, %v1220_v63  ;;  %v1229_v54 = vsel %vm1203_vm1, %v36_v5, 0  ;;  %v1382_v28 = vsub.f32 %v3689_v2, %v1381_v0  ;;  %v1244_v5 = vsel %vm1203_vm1, %v41_v15, 0 }
  0x61   :  { %v3698_v39 = vand.u32 4294901760, %v1229_v54 }
  0x62   :  { %2984 = vmatmul.mubr.f32.gmra.mxu1 %v3426_v31  ;;  %v3686_v1 = vsub.f32 %v1220_v63, %v3661_v6  ;;  %v1363_v63 = vand.u32 4294901760, %v1362_v27 }
  0x63   :  { %2958 = vmatmul.mubr.f32.gmra.mxu0 %v3426_v31  ;;  %2986 = vmatprep.mubr.f32.mxu1 %v3428_v35  ;;  %v37_v31 = vld [vmem:[%s4351_s0 + $0x48] sm:$0xff]  ;;  %v3725_v3 = vsub.f32 %v1229_v54, %v3698_v39  ;;  %v1383_v54 = vand.u32 4294901760, %v1382_v28 }
  0x64   :  { %2960 = vmatprep.mubr.f32.mxu0 %v3428_v35  ;;  %v1332_v35 = vsub.f32 %v3635_v57, %v1331_v30  ;;  %v1232_v47 = vsel %vm1203_vm1, %v37_v31, 0  ;;  %v1371_v60 = vand.u32 4294901760, %v3686_v1  ;;  %v3773_v31 = vsub.f32 %v1238_v25, %v3746_v26 }
  0x65   :  { %v3727_v24 = vand.u32 4294901760, %v1232_v47  ;;  %v1401_v38 = vand.u32 4294901760, %v3725_v3 }
  0x66   :  { %2987 = vmatmul.mubr.f32.gmra.mxu1 %v3430_v36  ;;  %v1333_v55 = vand.u32 4294901760, %v1332_v35  ;;  %v1372_v16 = vsub.f32 %v3686_v1, %v1371_v60  ;;  %v1392_v35 = vsub.f32 %v3722_v11, %v1391_v37 }
  0x67   :  { %2961 = vmatmul.mubr.f32.gmra.mxu0 %v3430_v36  ;;  %2989 = vmatprep.mubr.f32.mxu1 %v3455_v50  ;;  %v1342_v36 = vsub.f32 %v3649_v18, %v1341_v56  ;;  %v3755_v48 = vsub.f32 %v1232_v47, %v3727_v24  ;;  %v1402_v12 = vsub.f32 %v3725_v3, %v1401_v38  ;;  %v3783_v47 = vand.u32 4294901760, %v1244_v5 }
  0x68   :  { %2963 = vmatprep.mubr.f32.mxu0 %v3455_v50  ;;  %v1352_v50 = vsub.f32 %v3659_v40, %v1351_v59  ;;  %v1393_v8 = vand.u32 4294901760, %v1392_v35 }
  0x69   :  { %v3803_v27 = vsub.f32 %v1244_v5, %v3783_v47 }
  0x6a   :  { %2990 = vmatmul.mubr.f32.gmra.mxu1 %v3471_v61  ;;  %v1353_v33 = vand.u32 4294901760, %v1352_v50  ;;  %v1431_v50 = vand.u32 4294901760, %v3773_v31 }
  0x6b   :  { %2964 = vmatmul.mubr.f32.gmra.mxu0 %v3471_v61  ;;  %3024 = vmatprep.mubr.f32.mxu1 %v3606_v21  ;;  %v1343_v61 = vand.u32 4294901760, %v1342_v36  ;;  %v3788_v36 = vsub.f32 %v1241_v10, %v3762_v22  ;;  %v1422_v10 = vsub.f32 %v3760_v4, %v1421_v51 }
  0x6c   :  { %2996 = vmatprep.mubr.f32.mxu0 %v1323_v42  ;;  %v1411_v42 = vand.u32 4294901760, %v3755_v48  ;;  %v1432_v32 = vsub.f32 %v3773_v31, %v1431_v50 }
  0x6d   :  { %v1441_v15 = vand.u32 4294901760, %v3788_v36  ;;  %v1423_v5 = vand.u32 4294901760, %v1422_v10 }
  0x6e   :  { %3025 = vmatmul.mubr.f32.vlgmr.msra.gmra.mxu1 %v3611_v29  ;;  %v1412_v25 = vsub.f32 %v3755_v48, %v1411_v42 }
  0x6f   :  { %2997 = vmatmul.mubr.f32.vlgmr.msra.gmra.mxu0 %v1333_v55  ;;  %3077 = vmatpush3.msra.mxu1 %v3489_v14  ;;  %v1250_v55 = vsel %vm1203_vm1, %v43_v49, 0 }
  0x70   :  { %3049 = vmatpush3.msra.mxu0 %v3501_v52  ;;  %2999 = vmatprep.mubr.f32.mxu0 %v1343_v61  ;;  %v1373_v52 = vand.u32 4294901760, %v1372_v16  ;;  %v1403_v61 = vand.u32 4294901760, %v1402_v12  ;;  %v3813_v16 = vsub.f32 %v1247_v45, %v3790_v53  ;;  %v1413_v28 = vand.u32 4294901760, %v1412_v25 }
  0x71   :  { %3027 = vmatprep.mubr.f32.mxu1 %v3631_v43  ;;  %3050 = vmatprep.subr.mxu0 %v3556_v20  ;;  %v1442_v45 = vsub.f32 %v3788_v36, %v1441_v15 }
  0x72   :  { %3078 = vmatprep.subr.mxu1 %v3547_v19  ;;  %3028 = vmatmul.mubr.f32.gmra.mxu1 %v3637_v58  ;;  %v1461_v49 = vand.u32 4294901760, %v3813_v16 }
  0x73   :  { %3000 = vmatmul.mubr.f32.gmra.mxu0 %v1353_v33  ;;  %3030 = vmatprep.mubr.f32.mxu1 %v3646_v17  ;;  %v1451_v33 = vand.u32 4294901760, %v3803_v27  ;;  %v1443_v12 = vand.u32 4294901760, %v1442_v45 }
  0x74   :  { %3002 = vmatprep.mubr.f32.mxu0 %v1363_v63  ;;  %3051 = vmatpush3.msra.mxu0 %v3556_v20  ;;  %v3805_v20 = vand.u32 4294901760, %v1250_v55 }
  0x75   :  { %3079 = vmatpush3.msra.mxu1 %v3547_v19  ;;  %3104 = vmatprep.subr.mxu0 %v3507_v62 }
  0x76   :  { %3132 = vmatprep.subr.mxu1 %v3489_v14  ;;  %3031 = vmatmul.mubr.f32.gmra.mxu1 %v3661_v6  ;;  %v3821_v63 = vsub.f32 %v1250_v55, %v3805_v20  ;;  %v1462_v55 = vsub.f32 %v3813_v16, %v1461_v49 }
  0x77   :  { %3003 = vmatmul.mubr.f32.gmra.mxu0 %v1373_v52  ;;  %3033 = vmatprep.mubr.f32.mxu1 %v3663_v41  ;;  %v1433_v52 = vand.u32 4294901760, %v1432_v32 }
  0x78   :  { %3005 = vmatprep.mubr.f32.mxu0 %v1383_v54  ;;  %v1452_v54 = vsub.f32 %v3803_v27, %v1451_v33  ;;  %v1471_v35 = vand.u32 4294901760, %v3821_v63 }
  0x7a   :  { %3034 = vmatmul.mubr.f32.gmra.mxu1 %v3696_v13  ;;  %v1472_v25 = vsub.f32 %v3821_v63, %v1471_v35 }
  0x7b   :  { %3006 = vmatmul.mubr.f32.gmra.mxu0 %v1393_v8  ;;  %3036 = vmatprep.mubr.f32.mxu1 %v3698_v39  ;;  %v1453_v8 = vand.u32 4294901760, %v1452_v54 }
  0x7c   :  { %3008 = vmatprep.mubr.f32.mxu0 %v1403_v61  ;;  %v1463_v61 = vand.u32 4294901760, %v1462_v55  ;;  %v1473_v10 = vand.u32 4294901760, %v1472_v25 }
  0x7e   :  { %3037 = vmatmul.mubr.f32.gmra.mxu1 %v3727_v24 }
  0x7f   :  { %3009 = vmatmul.mubr.f32.gmra.mxu0 %v1413_v28  ;;  %3039 = vmatprep.mubr.f32.mxu1 %v3734_v9 }
  0x80   :  { %3011 = vmatprep.mubr.f32.mxu0 %v1423_v5 }
  0x82   :  { %3040 = vmatmul.mubr.f32.gmra.mxu1 %v3746_v26 }
  0x83   :  { %3012 = vmatmul.mubr.f32.gmra.mxu0 %v1433_v52  ;;  %3042 = vmatprep.mubr.f32.mxu1 %v3762_v22 }
  0x84   :  { %3014 = vmatprep.mubr.f32.mxu0 %v1443_v12 }
  0x86   :  { %3043 = vmatmul.mubr.f32.gmra.mxu1 %v3783_v47 }
  0x87   :  { %3015 = vmatmul.mubr.f32.gmra.mxu0 %v1453_v8  ;;  %3045 = vmatprep.mubr.f32.mxu1 %v3790_v53 }
  0x88   :  { %3017 = vmatprep.mubr.f32.mxu0 %v1463_v61 }
  0x8a   :  { %3046 = vmatmul.mubr.f32.gmra.mxu1 %v3805_v20 }
  0x8b   :  { %3018 = vmatmul.mubr.f32.gmra.mxu0 %v1473_v10  ;;  %3080 = vmatprep.mubr.f32.mxu1 %v1321_v7 }
  0x8c   :  { %3052 = vmatprep.mubr.f32.mxu0 %v3623_v34 }
  0x8e   :  { %3081 = vmatmul.mubr.f32.vlgmr.msra.gmra.mxu1 %v1331_v30 }
  0x8f   :  { %3053 = vmatmul.mubr.f32.vlgmr.msra.gmra.mxu0 %v3635_v57  ;;  %3133 = vmatpush3.msra.mxu1 %v3489_v14 }
  0x90   :  { %3105 = vmatpush3.msra.mxu0 %v3507_v62  ;;  %3055 = vmatprep.mubr.f32.mxu0 %v3649_v18 }
  0x91   :  { %3083 = vmatprep.mubr.f32.mxu1 %v1341_v56  ;;  %3106 = vmatprep.subr.mxu0 %v3565_v23 }
  0x92   :  { %3134 = vmatprep.subr.mxu1 %v3547_v19  ;;  %3084 = vmatmul.mubr.f32.gmra.mxu1 %v1351_v59 }
  0x93   :  { %3056 = vmatmul.mubr.f32.gmra.mxu0 %v3659_v40  ;;  %3086 = vmatprep.mubr.f32.mxu1 %v1361_v44 }
  0x94   :  { %3058 = vmatprep.mubr.f32.mxu0 %v3673_v46  ;;  %3107 = vmatpush3.msra.mxu0 %v3565_v23 }
  0x95   :  { %3135 = vmatpush3.msra.mxu1 %v3547_v19 }
  0x96   :  { %3087 = vmatmul.mubr.f32.gmra.mxu1 %v1371_v60 }
  0x97   :  { %3059 = vmatmul.mubr.f32.gmra.mxu0 %v3686_v1  ;;  %3089 = vmatprep.mubr.f32.mxu1 %v1381_v0 }
  0x98   :  { %3061 = vmatprep.mubr.f32.mxu0 %v3689_v2 }
  0x9a   :  { %3090 = vmatmul.mubr.f32.gmra.mxu1 %v1391_v37 }
  0x9b   :  { %3062 = vmatmul.mubr.f32.gmra.mxu0 %v3722_v11  ;;  %3092 = vmatprep.mubr.f32.mxu1 %v1401_v38 }
  0x9c   :  { %3064 = vmatprep.mubr.f32.mxu0 %v3725_v3 }
  0x9e   :  { %3093 = vmatmul.mubr.f32.gmra.mxu1 %v1411_v42 }
  0x9f   :  { %3065 = vmatmul.mubr.f32.gmra.mxu0 %v3755_v48  ;;  %3095 = vmatprep.mubr.f32.mxu1 %v1421_v51 }
  0xa0   :  { %3067 = vmatprep.mubr.f32.mxu0 %v3760_v4 }
  0xa2   :  { %3096 = vmatmul.mubr.f32.gmra.mxu1 %v1431_v50 }
  0xa3   :  { %3068 = vmatmul.mubr.f32.gmra.mxu0 %v3773_v31  ;;  %3098 = vmatprep.mubr.f32.mxu1 %v1441_v15 }
  0xa4   :  { %3070 = vmatprep.mubr.f32.mxu0 %v3788_v36 }
  0xa6   :  { %3099 = vmatmul.mubr.f32.gmra.mxu1 %v1451_v33 }
  0xa7   :  { %3071 = vmatmul.mubr.f32.gmra.mxu0 %v3803_v27  ;;  %3101 = vmatprep.mubr.f32.mxu1 %v1461_v49 }
  0xa8   :  { %3073 = vmatprep.mubr.f32.mxu0 %v3813_v16 }
  0xaa   :  { %3102 = vmatmul.mubr.f32.gmra.mxu1 %v1471_v35 }
  0xab   :  { %3074 = vmatmul.mubr.f32.gmra.mxu0 %v3821_v63  ;;  %3136 = vmatprep.mubr.f32.mxu1 %v3606_v21 }
  0xac   :  { %3108 = vmatprep.mubr.f32.mxu0 %v3606_v21 }
  0xae   :  { %3137 = vmatmul.mubr.f32.vlgmr.msra.gmra.mxu1 %v3611_v29 }
  0xaf   :  { %3109 = vmatmul.mubr.f32.vlgmr.msra.gmra.mxu0 %v3611_v29  ;;  %3139 = vmatprep.mubr.f32.mxu1 %v3631_v43 }
  0xb0   :  { %3111 = vmatprep.mubr.f32.mxu0 %v3631_v43 }
  0xb2   :  { %3140 = vmatmul.mubr.f32.gmra.mxu1 %v3637_v58 }
  0xb3   :  { %3112 = vmatmul.mubr.f32.gmra.mxu0 %v3637_v58  ;;  %3142 = vmatprep.mubr.f32.mxu1 %v3646_v17 }
  0xb4   :  { %3114 = vmatprep.mubr.f32.mxu0 %v3646_v17 }
  0xb6   :  { %3143 = vmatmul.mubr.f32.gmra.mxu1 %v3661_v6 }
  0xb7   :  { %3115 = vmatmul.mubr.f32.gmra.mxu0 %v3661_v6  ;;  %3145 = vmatprep.mubr.f32.mxu1 %v3663_v41 }
  0xb8   :  { %3117 = vmatprep.mubr.f32.mxu0 %v3663_v41 }
  0xba   :  { %3146 = vmatmul.mubr.f32.gmra.mxu1 %v3696_v13 }
  0xbb   :  { %3118 = vmatmul.mubr.f32.gmra.mxu0 %v3696_v13  ;;  %3148 = vmatprep.mubr.f32.mxu1 %v3698_v39 }
  0xbc   :  { %3120 = vmatprep.mubr.f32.mxu0 %v3698_v39 }
  0xbe   :  { %3149 = vmatmul.mubr.f32.gmra.mxu1 %v3727_v24 }
  0xbf   :  { %3121 = vmatmul.mubr.f32.gmra.mxu0 %v3727_v24  ;;  %3151 = vmatprep.mubr.f32.mxu1 %v3734_v9 }
  0xc0   :  { %3123 = vmatprep.mubr.f32.mxu0 %v3734_v9 }
  0xc2   :  { %3152 = vmatmul.mubr.f32.gmra.mxu1 %v3746_v26 }
  0xc3   :  { %3124 = vmatmul.mubr.f32.gmra.mxu0 %v3746_v26  ;;  %3154 = vmatprep.mubr.f32.mxu1 %v3762_v22 }
  0xc4   :  { %3126 = vmatprep.mubr.f32.mxu0 %v3762_v22 }
  0xc6   :  { %3155 = vmatmul.mubr.f32.gmra.mxu1 %v3783_v47 }
  0xc7   :  { %3127 = vmatmul.mubr.f32.gmra.mxu0 %v3783_v47  ;;  %3157 = vmatprep.mubr.f32.mxu1 %v3790_v53 }
  0xc8   :  { %3129 = vmatprep.mubr.f32.mxu0 %v3790_v53 }
  0xca   :  { %3158 = vmatmul.mubr.f32.gmra.mxu1 %v3805_v20 }
  0xcb   :  { %3130 = vmatmul.mubr.f32.gmra.mxu0 %v3805_v20 }
  0xce   :  { %v2866_v62 = vpop.f32.mrf.mxu1 }
  0xcf   :  { %v2840_v14 = vpop.f32.mrf.mxu0 }
  0xd0   :  { %v417_v19 = vadd.f32 %v2866_v62, %v2840_v14  ;;  %v410_v21 = vpop.f32.mrf.mxu1 }
  0xd1   :  { %v184_v23 = vpop.f32.mrf.mxu0 }
  0xd2   :  { %v411_v29 = vadd.f32 %v410_v21, %v184_v23  ;;  %v2869_v43 = vpop.f32.mrf.mxu1 }
  0xd3   :  { %v2843_v34 = vpop.f32.mrf.mxu0 }
  0xd4   :  { %v429_v57 = vadd.f32 %v2869_v43, %v2843_v34  ;;  %v422_v7 = vpop.f32.mrf.mxu1 }
  0xd5   :  { %v204_v58 = vpop.f32.mrf.mxu0 }
  0xd6   :  { %v423_v17 = vadd.f32 %v422_v7, %v204_v58  ;;  %v2872_v30 = vpop.f32.mrf.mxu1 }
  0xd7   :  { %v2846_v18 = vpop.f32.mrf.mxu0 }
  0xd8   :  { %v441_v40 = vadd.f32 %v2872_v30, %v2846_v18  ;;  %v434_v41 = vpop.f32.mrf.mxu1 }
  0xd9   :  { %v224_v6 = vpop.f32.mrf.mxu0 }
  0xda   :  { %v435_v46 = vadd.f32 %v434_v41, %v224_v6  ;;  %v2875_v59 = vpop.f32.mrf.mxu1 }
  0xdb   :  { %v2849_v56 = vpop.f32.mrf.mxu0 }
  0xdc   :  { %v453_v1 = vadd.f32 %v2875_v59, %v2849_v56  ;;  %v446_v13 = vpop.f32.mrf.mxu1 }
  0xdd   :  { %v244_v2 = vpop.f32.mrf.mxu0 }
  0xde   :  { %v447_v39 = vadd.f32 %v446_v13, %v244_v2  ;;  %v2878_v60 = vpop.f32.mrf.mxu1 }
  0xdf   :  { %v2852_v44 = vpop.f32.mrf.mxu0 }
  0xe0   :  { %v465_v0 = vadd.f32 %v2878_v60, %v2852_v44  ;;  %v458_v3 = vpop.f32.mrf.mxu1 }
  0xe1   :  { %v264_v11 = vpop.f32.mrf.mxu0 }
  0xe2   :  { %v459_v24 = vadd.f32 %v458_v3, %v264_v11  ;;  %v2881_v26 = vpop.f32.mrf.mxu1 }
  0xe3   :  { %v2855_v9 = vpop.f32.mrf.mxu0 }
  0xe4   :  { %v477_v37 = vadd.f32 %v2881_v26, %v2855_v9  ;;  %v470_v48 = vpop.f32.mrf.mxu1 }
  0xe5   :  { %v284_v38 = vpop.f32.mrf.mxu0 }
  0xe6   :  { %v471_v4 = vadd.f32 %v470_v48, %v284_v38  ;;  %v2884_v31 = vpop.f32.mrf.mxu1 }
  0xe7   :  { %v2858_v22 = vpop.f32.mrf.mxu0 }
  0xe8   :  { %v489_v42 = vadd.f32 %v2884_v31, %v2858_v22  ;;  %v482_v51 = vpop.f32.mrf.mxu1 }
  0xe9   :  { %v304_v47 = vpop.f32.mrf.mxu0 }
  0xea   :  { %v483_v36 = vadd.f32 %v482_v51, %v304_v47  ;;  %v2887_v50 = vpop.f32.mrf.mxu1 }
  0xeb   :  { %v2861_v53 = vpop.f32.mrf.mxu0 }
  0xec   :  { %v501_v27 = vadd.f32 %v2887_v50, %v2861_v53  ;;  %v494_v15 = vpop.f32.mrf.mxu1 }
  0xed   :  { %v324_v20 = vpop.f32.mrf.mxu0 }
  0xee   :  { %v3919_v16 = vadd.f32 %v494_v15, %v324_v20  ;;  %v2918_v32 = vpop.f32.mrf.mxu1 }
  0xef   :  { %v2892_v28 = vpop.f32.mrf.mxu0 }
  0xf0   :  { %v582_v33 = vadd.f32 %v2892_v28, %v417_v19  ;;  %v753_v5 = vpop.f32.mrf.mxu1 }
  0xf1   :  { %v574_v63 = vpop.f32.mrf.mxu0 }
  0xf2   :  { %v762_v45 = vadd.f32 %v2918_v32, %v582_v33  ;;  %v575_v49 = vadd.f32 %v574_v63, %v411_v29  ;;  %v2921_v54 = vpop.f32.mrf.mxu1 }
  0xf3   :  { %v2895_v52 = vpop.f32.mrf.mxu0 }
  0xf4   :  { %v754_v35 = vadd.f32 %v753_v5, %v575_v49  ;;  %v596_v12 = vadd.f32 %v2895_v52, %v429_v57  ;;  %v769_v8 = vpop.f32.mrf.mxu1 }
  0xf5   :  { %v588_v55 = vpop.f32.mrf.mxu0 }
  0xf6   :  { %v778_v25 = vadd.f32 %v2921_v54, %v596_v12  ;;  %v589_v61 = vadd.f32 %v588_v55, %v423_v17  ;;  %v2924_v14 = vpop.f32.mrf.mxu1 }
  0xf7   :  { %v2898_v10 = vpop.f32.mrf.mxu0 }
  0xf8   :  { %v770_v62 = vadd.f32 %v769_v8, %v589_v61  ;;  %v610_v23 = vadd.f32 %v2898_v10, %v441_v40  ;;  %v785_v34 = vpop.f32.mrf.mxu1 }
  0xf9   :  { %v602_v21 = vpop.f32.mrf.mxu0 }
  0xfa   :  { %v794_v43 = vadd.f32 %v2924_v14, %v610_v23  ;;  %v603_v19 = vadd.f32 %v602_v21, %v435_v46  ;;  %v2927_v7 = vpop.f32.mrf.mxu1 }
  0xfb   :  { %v2901_v58 = vpop.f32.mrf.mxu0 }
  0xfc   :  { %v786_v18 = vadd.f32 %v785_v34, %v603_v19  ;;  %v624_v29 = vadd.f32 %v2901_v58, %v453_v1  ;;  %v801_v6 = vpop.f32.mrf.mxu1 }
  0xfd   :  { %v616_v30 = vpop.f32.mrf.mxu0 }
  0xfe   :  { %v810_v41 = vadd.f32 %v2927_v7, %v624_v29  ;;  %v617_v57 = vadd.f32 %v616_v30, %v447_v39  ;;  %v2930_v59 = vpop.f32.mrf.mxu1 }
  0xff   :  { %v2904_v56 = vpop.f32.mrf.mxu0 }
 0x100   :  { %v802_v2 = vadd.f32 %v801_v6, %v617_v57  ;;  %v638_v17 = vadd.f32 %v2904_v56, %v465_v0  ;;  %v817_v44 = vpop.f32.mrf.mxu1 }
 0x101   :  { %v630_v13 = vpop.f32.mrf.mxu0 }
 0x102   :  { %v826_v60 = vadd.f32 %v2930_v59, %v638_v17  ;;  %v631_v40 = vadd.f32 %v630_v13, %v459_v24  ;;  %v2933_v3 = vpop.f32.mrf.mxu1 }
 0x103   :  { %v2907_v11 = vpop.f32.mrf.mxu0 }
 0x104   :  { %v818_v9 = vadd.f32 %v817_v44, %v631_v40  ;;  %v652_v46 = vadd.f32 %v2907_v11, %v477_v37  ;;  %v833_v38 = vpop.f32.mrf.mxu1 }
 0x105   :  { %v644_v26 = vpop.f32.mrf.mxu0 }
 0x106   :  { %v842_v48 = vadd.f32 %v2933_v3, %v652_v46  ;;  %v645_v1 = vadd.f32 %v644_v26, %v471_v4  ;;  %v2936_v31 = vpop.f32.mrf.mxu1 }
 0x107   :  { %v2910_v22 = vpop.f32.mrf.mxu0 }
 0x108   :  { %v834_v47 = vadd.f32 %v833_v38, %v645_v1  ;;  %v666_v39 = vadd.f32 %v2910_v22, %v489_v42  ;;  %v849_v53 = vpop.f32.mrf.mxu1 }
 0x109   :  { %v658_v51 = vpop.f32.mrf.mxu0 }
 0x10a   :  { %v858_v50 = vadd.f32 %v2936_v31, %v666_v39  ;;  %v659_v0 = vadd.f32 %v658_v51, %v483_v36  ;;  %v2939_v15 = vpop.f32.mrf.mxu1 }
 0x10b   :  { %v2913_v20 = vpop.f32.mrf.mxu0 }
 0x10c   :  { %v850_v28 = vadd.f32 %v849_v53, %v659_v0  ;;  %v680_v24 = vadd.f32 %v2913_v20, %v501_v27  ;;  %v865_v33 = vpop.f32.mrf.mxu1 }
 0x10d   :  { %v672_v32 = vpop.f32.mrf.mxu0 }
 0x10e   :  { %v874_v63 = vadd.f32 %v2939_v15, %v680_v24  ;;  %v673_v37 = vadd.f32 %v672_v32, %v3919_v16  ;;  %v2970_v49 = vpop.f32.mrf.mxu1 }
 0x10f   :  { %v2944_v5 = vpop.f32.mrf.mxu0 }
 0x110   :  { %v866_v4 = vadd.f32 %v865_v33, %v673_v37  ;;  %v954_v52 = vadd.f32 %v2944_v5, %v762_v45  ;;  %v1109_v12 = vpop.f32.mrf.mxu1 }
 0x111   :  { %v947_v54 = vpop.f32.mrf.mxu0 }
 0x112   :  { %v3922_v42 = vadd.f32 %v2970_v49, %v954_v52  ;;  %v948_v55 = vadd.f32 %v947_v54, %v754_v35  ;;  %v2973_v36 = vpop.f32.mrf.mxu1 }
 0x113   :  { %v2947_v8 = vpop.f32.mrf.mxu0 }
 0x114   :  { %v3924_v61 = vadd.f32 %v1109_v12, %v948_v55  ;;  %v966_v10 = vadd.f32 %v2947_v8, %v778_v25  ;;  %v1121_v14 = vpop.f32.mrf.mxu1 }
 0x115   :  { %v959_v27 = vpop.f32.mrf.mxu0 }
 0x116   :  { %v3926_v23 = vadd.f32 %v2973_v36, %v966_v10  ;;  %v960_v21 = vadd.f32 %v959_v27, %v770_v62  ;;  %v2976_v34 = vpop.f32.mrf.mxu1 }
 0x117   :  { %v2950_v16 = vpop.f32.mrf.mxu0 }
 0x118   :  { %v3928_v19 = vadd.f32 %v1121_v14, %v960_v21  ;;  %v978_v45 = vadd.f32 %v2950_v16, %v794_v43  ;;  %v1133_v7 = vpop.f32.mrf.mxu1 }
 0x119   :  { %v971_v58 = vpop.f32.mrf.mxu0 }
 0x11a   :  { %v3930_v29 = vadd.f32 %v2976_v34, %v978_v45  ;;  %v972_v35 = vadd.f32 %v971_v58, %v786_v18  ;;  %v2979_v6 = vpop.f32.mrf.mxu1 }
 0x11b   :  { %v2953_v30 = vpop.f32.mrf.mxu0 }
 0x11c   :  { %v3932_v57 = vadd.f32 %v1133_v7, %v972_v35  ;;  %v990_v25 = vadd.f32 %v2953_v30, %v810_v41  ;;  %v1145_v59 = vpop.f32.mrf.mxu1 }
 0x11d   :  { %v983_v56 = vpop.f32.mrf.mxu0 }
 0x11e   :  { %v3934_v17 = vadd.f32 %v2979_v6, %v990_v25  ;;  %v984_v62 = vadd.f32 %v983_v56, %v802_v2  ;;  %v2982_v44 = vpop.f32.mrf.mxu1 }
 0x11f   :  { %v2956_v13 = vpop.f32.mrf.mxu0 }
 0x120   :  { %v3936_v40 = vadd.f32 %v1145_v59, %v984_v62  ;;  %v1002_v43 = vadd.f32 %v2956_v13, %v826_v60  ;;  %v1157_v3 = vpop.f32.mrf.mxu1 }
 0x121   :  { %v995_v11 = vpop.f32.mrf.mxu0 }
 0x122   :  { %v3938_v46 = vadd.f32 %v2982_v44, %v1002_v43  ;;  %v996_v18 = vadd.f32 %v995_v11, %v818_v9  ;;  %v2985_v38 = vpop.f32.mrf.mxu1 }
 0x123   :  { %v2959_v26 = vpop.f32.mrf.mxu0 }
 0x124   :  { %v3940_v1 = vadd.f32 %v1157_v3, %v996_v18  ;;  %v1014_v41 = vadd.f32 %v2959_v26, %v842_v48  ;;  %v1169_v31 = vpop.f32.mrf.mxu1 }
 0x125   :  { %v1007_v22 = vpop.f32.mrf.mxu0 }
 0x126   :  { %v3942_v39 = vadd.f32 %v2985_v38, %v1014_v41  ;;  %v1008_v2 = vadd.f32 %v1007_v22, %v834_v47  ;;  %v2988_v53 = vpop.f32.mrf.mxu1 }
 0x127   :  { %v2962_v51 = vpop.f32.mrf.mxu0 }
 0x128   :  { %v3944_v0 = vadd.f32 %v1169_v31, %v1008_v2  ;;  %v1026_v60 = vadd.f32 %v2962_v51, %v858_v50  ;;  %v1181_v15 = vpop.f32.mrf.mxu1 }
 0x129   :  { %v1019_v20 = vpop.f32.mrf.mxu0 }
 0x12a   :  { %v3946_v24 = vadd.f32 %v2988_v53, %v1026_v60  ;;  %v1020_v9 = vadd.f32 %v1019_v20, %v850_v28  ;;  %v2991_v33 = vpop.f32.mrf.mxu1  ;;  %v12_v28 = vstv %s4352_s6 }
 0x12b   :  { %v2965_v32 = vpop.f32.mrf.mxu0  ;;  %13 = vst [vmem:[#allocation2] sm:$0x1] %v12_v28 }
 0x12c   :  { %v3948_v37 = vadd.f32 %v1181_v15, %v1020_v9  ;;  %v1038_v48 = vadd.f32 %v2965_v32, %v874_v63  ;;  %v1193_v49 = vpop.f32.mrf.mxu1 }
 0x12d   :  { %v1031_v5 = vpop.f32.mrf.mxu0 }
 0x12e   :  { %v3950_v52 = vadd.f32 %v2991_v33, %v1038_v48  ;;  %v1032_v47 = vadd.f32 %v1031_v5, %v866_v4  ;;  %v3952_v12 = vpop.f32.mrf.mxu1 }
 0x12f   :  { %v2998_v54 = vpop.f32.mrf.mxu0 }
 0x130   :  { %v3954_v55 = vadd.f32 %v1193_v49, %v1032_v47  ;;  %v3956_v8 = vpop.f32.mrf.mxu1 }
 0x131   :  { %v1325_v50 = vpop.f32.mrf.mxu0 }
 0x132   :  { %v3961_v63 = vpop.f32.mrf.mxu1 }
 0x133   :  { %v3001_v36 = vpop.f32.mrf.mxu0 }
 0x134   :  { %v3963_v27 = vpop.f32.mrf.mxu1 }
 0x135   :  { %v1345_v10 = vpop.f32.mrf.mxu0 }
 0x136   :  { %v3965_v14 = vpop.f32.mrf.mxu1 }
 0x137   :  { %v3004_v4 = vpop.f32.mrf.mxu0 }
 0x138   :  { %v3967_v16 = vpop.f32.mrf.mxu1 }
 0x139   :  { %v1365_v21 = vpop.f32.mrf.mxu0 }
 0x13a   :  { %v3969_v45 = vpop.f32.mrf.mxu1 }
 0x13b   :  { %v3007_v34 = vpop.f32.mrf.mxu0 }
 0x13c   :  { %v3971_v7 = vpop.f32.mrf.mxu1 }
 0x13d   :  { %v1385_v58 = vpop.f32.mrf.mxu0 }
 0x13e   :  { %v3973_v30 = vpop.f32.mrf.mxu1 }
 0x13f   :  { %v3010_v35 = vpop.f32.mrf.mxu0 }
 0x140   :  { %v3975_v25 = vpop.f32.mrf.mxu1 }
 0x141   :  { %v1405_v6 = vpop.f32.mrf.mxu0 }
 0x142   :  { %v3977_v59 = vpop.f32.mrf.mxu1 }
 0x143   :  { %v3013_v56 = vpop.f32.mrf.mxu0 }
 0x144   :  { %v3979_v13 = vpop.f32.mrf.mxu1 }
 0x145   :  { %v1425_v62 = vpop.f32.mrf.mxu0 }
 0x146   :  { %v3983_v43 = vpop.f32.mrf.mxu1 }
 0x147   :  { %v3981_v44 = vpop.f32.mrf.mxu0 }
 0x148   :  { %v3987_v3 = vpop.f32.mrf.mxu1 }
 0x149   :  { %v3985_v11 = vpop.f32.mrf.mxu0  ;;  %4356 = vst [vmem:[#allocation3_spill] sm:$0xff] %v3987_v3 }
 0x14a   :  { %v3991_v26 = vpop.f32.mrf.mxu1 }
 0x14b   :  { %v3989_v18 = vpop.f32.mrf.mxu0  ;;  %4357 = vst [vmem:[#allocation4_spill] sm:$0xff] %v3991_v26 }
 0x14c   :  { %v3995_v41 = vpop.f32.mrf.mxu1 }
 0x14d   :  { %v3993_v38 = vpop.f32.mrf.mxu0  ;;  %4358 = vst [vmem:[#allocation5_spill] sm:$0xff] %v3995_v41 }
 0x14e   :  { %v3082_v31 = vpop.f32.mrf.mxu1 }
 0x14f   :  { %v3054_v22 = vpop.f32.mrf.mxu0 }
 0x150   :  { %v1902_v51 = vpop.f32.mrf.mxu1 }
 0x151   :  { %v1722_v2 = vpop.f32.mrf.mxu0 }
 0x152   :  { %v3997_v60 = vpop.f32.mrf.mxu1 }
 0x153   :  { %v3057_v53 = vpop.f32.mrf.mxu0 }
 0x154   :  { %v3999_v15 = vpop.f32.mrf.mxu1 }
 0x155   :  { %v1736_v20 = vpop.f32.mrf.mxu0  ;;  %4359 = vst [vmem:[#allocation6_spill] sm:$0xff] %v3999_v15 }
 0x156   :  { %v4003_v32 = vpop.f32.mrf.mxu1 }
 0x157   :  { %v4001_v9 = vpop.f32.mrf.mxu0  ;;  %4360 = vst [vmem:[#allocation7_spill] sm:$0xff] %v4003_v32 }
 0x158   :  { %v4007_v48 = vpop.f32.mrf.mxu1 }
 0x159   :  { %v4005_v33 = vpop.f32.mrf.mxu0  ;;  %4362 = vst [vmem:[#allocation9_spill] sm:$0xff] %v4007_v48  ;;  %v1336_v48 = vadd.f32 %v2998_v54, %v3922_v42 }
 0x15a   :  { %4361 = vst [vmem:[#allocation8_spill] sm:$0xff] %v4005_v33  ;;  %v4011_v49 = vpop.f32.mrf.mxu1 }
 0x15b   :  { %v4009_v5 = vpop.f32.mrf.mxu0  ;;  %4364 = vst [vmem:[#allocation11_spill] sm:$0xff] %v4011_v49 }
 0x15c   :  { %4363 = vst [vmem:[#allocation10_spill] sm:$0xff] %v4009_v5  ;;  %v4015_v28 = vpop.f32.mrf.mxu1 }
 0x15d   :  { %v4013_v47 = vpop.f32.mrf.mxu0  ;;  %4366 = vst [vmem:[#allocation13_spill] sm:$0xff] %v4015_v28  ;;  %v1326_v28 = vadd.f32 %v1325_v50, %v3924_v61  ;;  %v1366_v61 = vadd.f32 %v1365_v21, %v3932_v57  ;;  %v1426_v21 = vadd.f32 %v1425_v62, %v3944_v0  ;;  %v1446_v62 = vadd.f32 %v3985_v11, %v3948_v37 }
 0x15e   :  { %4365 = vst [vmem:[#allocation12_spill] sm:$0xff] %v4013_v47  ;;  %v4019_v26 = vpop.f32.mrf.mxu1 }
 0x15f   :  { %v4017_v41 = vpop.f32.mrf.mxu0  ;;  %4368 = vst [vmem:[#allocation15_spill] sm:$0xff] %v4019_v26  ;;  %v1563_v26 = vadd.f32 %v3952_v12, %v1336_v48  ;;  %v1557_v54 = vadd.f32 %v3956_v8, %v1326_v28  ;;  %v1416_v12 = vadd.f32 %v3010_v35, %v3938_v46  ;;  %v1581_v46 = vadd.f32 %v3967_v16, %v1366_v61 }
 0x160   :  { %4367 = vst [vmem:[#allocation14_spill] sm:$0xff] %v4017_v41  ;;  %v4023_v15 = vpop.f32.mrf.mxu1 }
 0x161   :  { %v4021_v3 = vpop.f32.mrf.mxu0  ;;  %4370 = vst [vmem:[#allocation17_spill] sm:$0xff] %v4023_v15  ;;  %v1356_v15 = vadd.f32 %v3001_v36, %v3926_v23  ;;  %v1730_v50 = vadd.f32 %v3054_v22, %v1563_v26  ;;  %v1406_v36 = vadd.f32 %v1405_v6, %v3940_v1  ;;  %v4375_v11 = vld [vmem:[#allocation8_spill] sm:$0xff] }
 0x162   :  { %4369 = vst [vmem:[#allocation16_spill] sm:$0xff] %v4021_v3  ;;  %v4027_v33 = vpop.f32.mrf.mxu1 }
 0x163   :  { %v4025_v32 = vpop.f32.mrf.mxu0  ;;  %4372 = vst [vmem:[#allocation19_spill] sm:$0xff] %v4027_v33  ;;  %v1376_v33 = vadd.f32 %v3004_v4, %v3930_v29  ;;  %v1575_v29 = vadd.f32 %v3961_v63, %v1356_v15  ;;  %v1436_v4 = vadd.f32 %v3013_v56, %v3942_v39  ;;  %v1605_v6 = vadd.f32 %v3975_v25, %v1406_v36 }
 0x164   :  { %4371 = vst [vmem:[#allocation18_spill] sm:$0xff] %v4025_v32  ;;  %v4032_v49 = vpop.f32.mrf.mxu1  ;;  %v1346_v32 = vadd.f32 %v1345_v10, %v3928_v19  ;;  %v1723_v10 = vadd.f32 %v1722_v2, %v1557_v54 }
 0x165   :  { %v4030_v5 = vpop.f32.mrf.mxu0  ;;  %v1587_v57 = vadd.f32 %v3965_v14, %v1376_v33  ;;  %v1456_v14 = vadd.f32 %v3981_v44, %v3946_v24  ;;  %v1623_v0 = vadd.f32 %v3977_v59, %v1436_v4  ;;  %v4083_v24 = vld [vmem:[%s4353_s4] ss:$0 sm:$0xff]  ;;  %v1617_v44 = vadd.f32 %v3979_v13, %v1426_v21  ;;  %v4379_v33 = vld [vmem:[#allocation4_spill] sm:$0xff] }
 0x166   :  { %v4037_v41 = vpop.f32.mrf.mxu1  ;;  %v1569_v8 = vadd.f32 %v3963_v27, %v1346_v32  ;;  %v1611_v27 = vadd.f32 %v3973_v30, %v1416_v12  ;;  %v1903_v56 = vadd.f32 %v1902_v51, %v1723_v10  ;;  %v4377_v51 = vld [vmem:[#allocation6_spill] sm:$0xff]  ;;  %v4382_v10 = vld [vmem:[#allocation7_spill] sm:$0xff] }
 0x167   :  { %v4035_v47 = vpop.f32.mrf.mxu0  ;;  %4374 = vst [vmem:[#allocation21_spill] sm:$0xff] %v4037_v41  ;;  %v1386_v41 = vadd.f32 %v1385_v58, %v3936_v40  ;;  %v1744_v58 = vadd.f32 %v3057_v53, %v1575_v29  ;;  %v1635_v37 = vadd.f32 %v3983_v43, %v1456_v14  ;;  %v4380_v43 = vld [vmem:[#allocation5_spill] sm:$0xff] }
 0x168   :  { %4373 = vst [vmem:[#allocation20_spill] sm:$0xff] %v4035_v47  ;;  %v4045_v42 = vpop.f32.mrf.mxu1  ;;  %v1396_v47 = vadd.f32 %v3007_v34, %v3934_v17  ;;  %v1911_v34 = vadd.f32 %v3082_v31, %v1730_v50  ;;  %v1737_v26 = vadd.f32 %v1736_v20, %v1569_v8 }
 0x169   :  { %v4043_v3 = vpop.f32.mrf.mxu0  ;;  %v1593_v1 = vadd.f32 %v3971_v7, %v1386_v41  ;;  %v1466_v7 = vadd.f32 %v3993_v38, %v3954_v55  ;;  %v1927_v59 = vadd.f32 %v3997_v60, %v1744_v58  ;;  %v4376_v55 = vld [vmem:[#allocation10_spill] sm:$0xff]  ;;  %v4378_v60 = vld [vmem:[#allocation3_spill] sm:$0xff] }
 0x16a   :  { %v4054_v19 = vpop.f32.mrf.mxu1  ;;  %v1599_v63 = vadd.f32 %v3969_v45, %v1396_v47  ;;  %v1476_v45 = vadd.f32 %v3989_v18, %v3950_v52  ;;  %v1758_v52 = vadd.f32 %v4001_v9, %v1587_v57  ;;  %v1751_v18 = vadd.f32 %v4375_v11, %v1581_v46  ;;  %v4381_v9 = vld [vmem:[#allocation12_spill] sm:$0xff]  ;;  %v4383_v57 = vld [vmem:[#allocation9_spill] sm:$0xff]  ;;  %v4384_v46 = vld [vmem:[#allocation11_spill] sm:$0xff] }
 0x16b   :  { %v4052_v23 = vpop.f32.mrf.mxu0  ;;  %v1919_v53 = vadd.f32 %v4377_v51, %v1737_v26  ;;  %v1629_v32 = vadd.f32 %v4378_v60, %v1446_v62  ;;  %v4098_v47 = vadd.f32 %v4380_v43, %v1466_v7  ;;  %v1765_v28 = vadd.f32 %v4381_v9, %v1593_v1  ;;  %v4386_v26 = vld [vmem:[#allocation13_spill] sm:$0xff]  ;;  %v4387_v62 = vld [vmem:[#allocation16_spill] sm:$0xff]  ;;  %v4388_v7 = vld [vmem:[#allocation18_spill] sm:$0xff] }
 0x16c   :  { %v4063_v40 = vpop.f32.mrf.mxu1  ;;  %v1772_v38 = vadd.f32 %v4376_v55, %v1599_v63  ;;  %v1647_v48 = vadd.f32 %v4379_v33, %v1476_v45  ;;  %v1943_v8 = vadd.f32 %v4382_v10, %v1758_v52  ;;  %v1935_v4 = vadd.f32 %v4383_v57, %v1751_v18  ;;  %v4389_v11 = vld [vmem:[#allocation15_spill] sm:$0xff] }
 0x16d   :  { %v4061_v17 = vpop.f32.mrf.mxu0  ;;  %v1779_v45 = vadd.f32 %v4387_v62, %v1605_v6  ;;  %v1793_v55 = vadd.f32 %v4030_v5, %v1617_v44  ;;  %v4391_v60 = vld [vmem:[#allocation19_spill] sm:$0xff] }
 0x16e   :  { %v3138_v35 = vpop.f32.mrf.mxu1  ;;  %v1959_v21 = vadd.f32 %v4384_v46, %v1772_v38  ;;  %v1807_v46 = vadd.f32 %v4043_v3, %v1629_v32  ;;  %v4393_v32 = vld [vmem:[#allocation21_spill] sm:$0xff]  ;;  %v1821_v62 = vadd.f32 %v4061_v17, %v4098_v47 }
 0x16f   :  { %v3110_v39 = vpop.f32.mrf.mxu0 }
 0x170   :  { %v2106_v16 = vadd.f32 %v3110_v39, %v1911_v34  ;;  %v2262_v25 = vpop.f32.mrf.mxu1  ;;  %v4385_v34 = vld [vmem:[#allocation14_spill] sm:$0xff] }
 0x171   :  { %v2099_v30 = vpop.f32.mrf.mxu0  ;;  %v1786_v58 = vadd.f32 %v4385_v34, %v1611_v27 }
 0x172   :  { %v2269_v41 = vadd.f32 %v3138_v35, %v2106_v16  ;;  %v2100_v22 = vadd.f32 %v2099_v30, %v1903_v56  ;;  %v3141_v2 = vpop.f32.mrf.mxu1  ;;  %v1951_v16 = vadd.f32 %v4386_v26, %v1765_v28  ;;  %v1800_v30 = vadd.f32 %v4388_v7, %v1623_v0 }
 0x173   :  { %v3113_v31 = vpop.f32.mrf.mxu0  ;;  %v1975_v18 = vadd.f32 %v4389_v11, %v1786_v58 }
 0x174   :  { %v4093_v20 = vadd.f32 %v4083_v24, %v2269_v41  ;;  %v2263_v13 = vadd.f32 %v2262_v25, %v2100_v22  ;;  %v2118_v15 = vadd.f32 %v3113_v31, %v1927_v59  ;;  %v2274_v61 = vpop.f32.mrf.mxu1  ;;  %v1991_v33 = vadd.f32 %v4391_v60, %v1800_v30 }
 0x175   :  { %v2111_v54 = vpop.f32.mrf.mxu0 }
 0x176   :  { %v2396_v50 = vmin.f32 %v4093_v20, 0.0  ;;  %v4103_v12 = vadd.f32 %v4083_v24, %v2263_v13  ;;  %v2281_v29 = vadd.f32 %v3141_v2, %v2118_v15  ;;  %v2112_v36 = vadd.f32 %v2111_v54, %v1919_v53  ;;  %v3144_v14 = vpop.f32.mrf.mxu1  ;;  %v4390_v13 = vld [vmem:[#allocation17_spill] sm:$0xff] }
 0x177   :  { %v3116_v63 = vpop.f32.mrf.mxu0  ;;  %v1967_v15 = vadd.f32 %v4390_v13, %v1779_v45  ;;  %vm2380_vm3 = vcmp.gt.f32.partialorder %v4093_v20, 0.0 }
 0x178   :  { %v2413_v1 = vmul.f32 1.442695, %v2396_v50  ;;  %v2395_v39 = vmin.f32 %v4103_v12, 0.0  ;;  %v4111_v35 = vadd.f32 %v4083_v24, %v2281_v29  ;;  %v2275_v56 = vadd.f32 %v2274_v61, %v2112_v36  ;;  %v2286_v41 = vpop.f32.mrf.mxu1  ;;  %v4392_v29 = vld [vmem:[#allocation20_spill] sm:$0xff] }
 0x179   :  { %v2130_v25 = vadd.f32 %v3116_v63, %v1943_v8  ;;  %v2123_v59 = vpop.f32.mrf.mxu0  ;;  %v1983_v50 = vadd.f32 %v4032_v49, %v1793_v55  ;;  %v1814_v36 = vadd.f32 %v4392_v29, %v1635_v37  ;;  %v1828_v63 = vadd.f32 %v4052_v23, %v1647_v48 }
 0x17a   :  { %3160 = vpow2.f32 %v2413_v1  ;;  %v2411_v27 = vmul.f32 1.442695, %v2395_v39  ;;  %v2398_v22 = vmin.f32 %v4111_v35, 0.0  ;;  %v4118_v52 = vadd.f32 %v4083_v24, %v2275_v56  ;;  %v3147_v6 = vpop.f32.mrf.mxu1 }
 0x17b   :  { %v2124_v38 = vadd.f32 %v2123_v59, %v1935_v4  ;;  %v2293_v31 = vadd.f32 %v3144_v14, %v2130_v25  ;;  %v3119_v2 = vpop.f32.mrf.mxu0  ;;  %vm2379_vm4 = vcmp.gt.f32.partialorder %v4103_v12, 0.0  ;;  %vm2382_vm5 = vcmp.gt.f32.partialorder %v4111_v35, 0.0 }
 0x17c   :  { %3162 = vpow2.f32 %v2411_v27  ;;  %v2417_v0 = vmul.f32 1.442695, %v2398_v22  ;;  %v2397_v51 = vmin.f32 %v4118_v52, 0.0  ;;  %v2142_v53 = vadd.f32 %v3119_v2, %v1959_v21  ;;  %v2298_v54 = vpop.f32.mrf.mxu1 }
 0x17d   :  { %v4126_v43 = vadd.f32 %v4083_v24, %v2293_v31  ;;  %v2287_v9 = vadd.f32 %v2286_v41, %v2124_v38  ;;  %v2135_v28 = vpop.f32.mrf.mxu0  ;;  %v1999_v41 = vadd.f32 %v4045_v42, %v1807_v46  ;;  %v2023_v27 = vadd.f32 %v4054_v19, %v1828_v63 }
 0x17e   :  { %3164 = vpow2.f32 %v2417_v0  ;;  %v2415_v5 = vmul.f32 1.442695, %v2397_v51  ;;  %v2136_v44 = vadd.f32 %v2135_v28, %v1951_v16  ;;  %v2305_v61 = vadd.f32 %v3147_v6, %v2142_v53  ;;  %v3150_v4 = vpop.f32.mrf.mxu1 }
 0x17f   :  { %v2400_v10 = vmin.f32 %v4126_v43, 0.0  ;;  %v4132_v8 = vadd.f32 %v4083_v24, %v2287_v9  ;;  %v3122_v57 = vpop.f32.mrf.mxu0  ;;  %v2007_v16 = vadd.f32 %v4393_v32, %v1814_v36  ;;  %v2015_v31 = vadd.f32 %v4063_v40, %v1821_v62 }
 0x180   :  { %v4136_v21 = vadd.f32 %v4083_v24, %v2305_v61  ;;  %v2154_v34 = vadd.f32 %v3122_v57, %v1975_v18  ;;  %v2299_v58 = vadd.f32 %v2298_v54, %v2136_v44  ;;  %3166 = vpow2.f32 %v2415_v5  ;;  %v2310_v1 = vpop.f32.mrf.mxu1  ;;  %v4171_v44 = vld [vmem:[%s4354_s5] ss:$0 sm:$0xff] }
 0x181   :  { %v2421_v49 = vmul.f32 1.442695, %v2400_v10  ;;  %v2399_v37 = vmin.f32 %v4132_v8, 0.0  ;;  %v2147_v14 = vpop.f32.mrf.mxu0  ;;  %vm2381_vm6 = vcmp.gt.f32.partialorder %v4118_v52, 0.0  ;;  %vm2383_vm7 = vcmp.gt.f32.partialorder %v4132_v8, 0.0 }
 0x182   :  { %v2402_v39 = vmin.f32 %v4136_v21, 0.0  ;;  %v4142_v56 = vadd.f32 %v4083_v24, %v2299_v58  ;;  %v2148_v26 = vadd.f32 %v2147_v14, %v1967_v15  ;;  %v2317_v3 = vadd.f32 %v3150_v4, %v2154_v34  ;;  %v3153_v45 = vpop.f32.mrf.mxu1 }
 0x183   :  { %3168 = vpow2.f32 %v2421_v49  ;;  %v2419_v23 = vmul.f32 1.442695, %v2399_v37  ;;  %v3125_v48 = vpop.f32.mrf.mxu0  ;;  %vm2384_vm8 = vcmp.gt.f32.partialorder %v4126_v43, 0.0  ;;  %vm2386_vm9 = vcmp.gt.f32.partialorder %v4136_v21, 0.0 }
 0x184   :  { %v2425_v7 = vmul.f32 1.442695, %v2402_v39  ;;  %v2401_v30 = vmin.f32 %v4142_v56, 0.0  ;;  %v4149_v25 = vadd.f32 %v4083_v24, %v2317_v3  ;;  %v2166_v59 = vadd.f32 %v3125_v48, %v1991_v33  ;;  %v2322_v17 = vpop.f32.mrf.mxu1 }
 0x185   :  { %3170 = vpow2.f32 %v2419_v23  ;;  %v2311_v22 = vadd.f32 %v2310_v1, %v2148_v26  ;;  %v2159_v11 = vpop.f32.mrf.mxu0  ;;  %vm2385_vm10 = vcmp.gt.f32.partialorder %v4142_v56, 0.0 }
 0x186   :  { %3172 = vpow2.f32 %v2425_v7  ;;  %v2423_v47 = vmul.f32 1.442695, %v2401_v30  ;;  %v2404_v18 = vmin.f32 %v4149_v25, 0.0  ;;  %v2160_v55 = vadd.f32 %v2159_v11, %v1983_v50  ;;  %v3156_v42 = vpop.f32.mrf.mxu1 }
 0x187   :  { %v3161_v38 = vpop.eup %3160  ;;  %v4156_v2 = vadd.f32 %v4083_v24, %v2311_v22  ;;  %v2329_v6 = vadd.f32 %v3153_v45, %v2166_v59  ;;  %v3128_v0 = vpop.f32.mrf.mxu0  ;;  %vm2388_vm11 = vcmp.gt.f32.partialorder %v4149_v25, 0.0 }
 0x188   :  { %3174 = vpow2.f32 %v2423_v47  ;;  %v2429_v19 = vmul.f32 1.442695, %v2404_v18  ;;  %v2178_v51 = vadd.f32 %v3128_v0, %v2007_v16  ;;  %v2323_v53 = vadd.f32 %v2322_v17, %v2160_v55  ;;  %v2334_v33 = vpop.f32.mrf.mxu1 }
 0x189   :  { %v3163_v13 = vpop.eup %3162  ;;  %v2403_v15 = vmin.f32 %v4156_v2, 0.0  ;;  %v4162_v60 = vadd.f32 %v4083_v24, %v2329_v6  ;;  %v2171_v40 = vpop.f32.mrf.mxu0  ;;  %v2609_v9 = vadd.f32 -1.0, %v3161_v38  ;;  %vm2387_vm12 = vcmp.gt.f32.partialorder %v4156_v2, 0.0 }
 0x18a   :  { %3176 = vpow2.f32 %v2429_v19  ;;  %v4166_v28 = vadd.f32 %v4083_v24, %v2323_v53  ;;  %v2172_v54 = vadd.f32 %v2171_v40, %v1999_v41  ;;  %v2341_v5 = vadd.f32 %v3156_v42, %v2178_v51  ;;  %v3159_v10 = vpop.f32.mrf.mxu1 }
 0x18b   :  { %v3165_v61 = vpop.eup %3164  ;;  %v2427_v50 = vmul.f32 1.442695, %v2403_v15  ;;  %v2406_v29 = vmin.f32 %v4162_v60, 0.0  ;;  %v3131_v36 = vpop.f32.mrf.mxu0  ;;  %v2460_v57 = vsel %vm2380_vm3, %v4093_v20, %v2609_v9  ;;  %v2608_v4 = vadd.f32 -1.0, %v3163_v13 }
 0x18c   :  { %v2405_v46 = vmin.f32 %v4166_v28, 0.0  ;;  %v4180_v34 = vadd.f32 %v4083_v24, %v2341_v5  ;;  %v2190_v58 = vadd.f32 %v3131_v36, %v2023_v27  ;;  %v2335_v63 = vadd.f32 %v2334_v33, %v2172_v54  ;;  %v2346_v1 = vpop.f32.mrf.mxu1 }
 0x18d   :  { %3178 = vpow2.f32 %v2427_v50  ;;  %v2433_v49 = vmul.f32 1.442695, %v2406_v29  ;;  %v2183_v37 = vpop.f32.mrf.mxu0  ;;  %v2483_v14 = vmul.f32 %v4171_v44, %v2460_v57  ;;  %v2611_v39 = vadd.f32 -1.0, %v3165_v61  ;;  %v3167_v26 = vpop.eup %3166 }
 0x18e   :  { %v2431_v3 = vmul.f32 1.442695, %v2405_v46  ;;  %v2408_v20 = vmin.f32 %v4180_v34, 0.0  ;;  %v4186_v32 = vadd.f32 %v4083_v24, %v2335_v63  ;;  %v2184_v16 = vadd.f32 %v2183_v37, %v2015_v31 }
 0x18f   :  { %3180 = vpow2.f32 %v2433_v49  ;;  %v2353_v62 = vadd.f32 %v3159_v10, %v2190_v58  ;;  %v2502_v23 = vsel %vm2498_vm2, %v2483_v14, 0.0  ;;  %v2462_v48 = vsel %vm2382_vm5, %v4111_v35, %v2611_v39 }
 0x190   :  { %v3169_v45 = vpop.eup %3168  ;;  %3182 = vpow2.f32 %v2431_v3  ;;  %v2437_v7 = vmul.f32 1.442695, %v2408_v20  ;;  %v2407_v30 = vmin.f32 %v4186_v32, 0.0  ;;  %2503 = vadd.xlane.f32.xlu0 %v2502_v23  ;;  %v2347_v59 = vadd.f32 %v2346_v1, %v2184_v16 }
 0x191   :  { %v4196_v41 = vadd.f32 %v4083_v24, %v2353_v62  ;;  %v2485_v27 = vmul.f32 %v4171_v44, %v2462_v48  ;;  %v2459_v22 = vsel %vm2379_vm4, %v4103_v12, %v2608_v4  ;;  %v2610_v11 = vadd.f32 -1.0, %v3167_v26 }
 0x192   :  { %v3171_v17 = vpop.eup %3170  ;;  %3184 = vpow2.f32 %v2437_v7  ;;  %v2435_v35 = vmul.f32 1.442695, %v2407_v30  ;;  %v4203_v47 = vadd.f32 %v4083_v24, %v2347_v59  ;;  %v2482_v18 = vmul.f32 %v4171_v44, %v2459_v22 }
 0x193   :  { %v3173_v55 = vpop.eup %3172  ;;  %v2410_v38 = vmin.f32 %v4196_v41, 0.0  ;;  %v2508_v31 = vsel %vm2498_vm2, %v2485_v27, 0.0  ;;  %v2461_v6 = vsel %vm2381_vm6, %v4118_v52, %v2610_v11  ;;  %v2612_v0 = vadd.f32 -1.0, %v3171_v17 }
 0x194   :  { %3186 = vpow2.f32 %v2435_v35  ;;  %v2409_v12 = vmin.f32 %v4203_v47, 0.0  ;;  %2509 = vadd.xlane.f32.xlu1 %v2508_v31  ;;  %v2499_v42 = vsel %vm2498_vm2, %v2482_v18, 0.0  ;;  %v2484_v24 = vmul.f32 %v4171_v44, %v2461_v6 }
 0x195   :  { %v3175_v19 = vpop.eup %3174  ;;  %v2441_v51 = vmul.f32 1.442695, %v2410_v38  ;;  %2500 = vadd.xlane.f32.xlu0 %v2499_v42  ;;  %v2463_v53 = vsel %vm2383_vm7, %v4132_v8, %v2612_v0  ;;  %v2613_v13 = vadd.f32 -1.0, %v3169_v45  ;;  %v2615_v15 = vadd.f32 -1.0, %v3173_v55  ;;  %v4266_v42 = vld [vmem:[#allocation2] ss:$0 sm:$0xff] }
 0x196   :  { %v2439_v40 = vmul.f32 1.442695, %v2409_v12  ;;  %v2486_v52 = vmul.f32 %v4171_v44, %v2463_v53  ;;  %v2614_v33 = vadd.f32 -1.0, %v3175_v19  ;;  %v2505_v54 = vsel %vm2498_vm2, %v2484_v24, 0.0 }
 0x197   :  { %v3177_v9 = vpop.eup %3176  ;;  %3188 = vpow2.f32 %v2441_v51  ;;  %v2464_v5 = vsel %vm2384_vm8, %v4126_v43, %v2613_v13  ;;  %v2466_v8 = vsel %vm2386_vm9, %v4136_v21, %v2615_v15  ;;  %vm2389_vm13 = vcmp.gt.f32.partialorder %v4166_v28, 0.0 }
 0x198   :  { %3190 = vpow2.f32 %v2439_v40  ;;  %2506 = vadd.xlane.f32.xlu1 %v2505_v54  ;;  %v2511_v61 = vsel %vm2498_vm2, %v2486_v52, 0.0  ;;  %v2487_v50 = vmul.f32 %v4171_v44, %v2464_v5  ;;  %v2465_v29 = vsel %vm2385_vm10, %v4142_v56, %v2614_v33 }
 0x199   :  { %2512 = vadd.xlane.f32.xlu0 %v2511_v61  ;;  %v2488_v36 = vmul.f32 %v4171_v44, %v2465_v29  ;;  %v2617_v10 = vadd.f32 -1.0, %v3177_v9  ;;  %v2489_v21 = vmul.f32 %v4171_v44, %v2466_v8  ;;  %vm2390_vm14 = vcmp.gt.f32.partialorder %v4162_v60, 0.0 }
 0x19a   :  { %v3179_v57 = vpop.eup %3178  ;;  %v2514_v43 = vsel %vm2498_vm2, %v2487_v50, 0.0  ;;  %vm2391_vm15 = vcmp.gt.f32.partialorder %v4186_v32, 0.0  ;;  %vm2392_vm0 = vcmp.gt.f32.partialorder %v4180_v34, 0.0  ;;  %vm2393_vm1 = vcmp.gt.f32.partialorder %v4203_v47, 0.0 }
 0x19b   :  { %v2517_v4 = vsel %vm2498_vm2, %v2488_v36, 0.0  ;;  %v2616_v46 = vadd.f32 -1.0, %v3179_v57  ;;  %v2468_v56 = vsel %vm2388_vm11, %v4149_v25, %v2617_v10  ;;  %v2520_v26 = vsel %vm2498_vm2, %v2489_v21, 0.0 }
 0x19c   :  { %v3181_v58 = vpop.eup %3180  ;;  %2515 = vadd.xlane.f32.xlu1 %v2514_v43  ;;  %v2491_v3 = vmul.f32 %v4171_v44, %v2468_v56  ;;  %vm2394_vm3 = vcmp.gt.f32.partialorder %v4196_v41, 0.0 }
 0x19d   :  { %v3183_v63 = vpop.eup %3182  ;;  %2518 = vadd.xlane.f32.xlu0 %v2517_v4  ;;  %v2467_v49 = vsel %vm2387_vm12, %v4156_v2, %v2616_v46  ;;  %v2619_v37 = vadd.f32 -1.0, %v3181_v58 }
 0x19e   :  { %v2490_v14 = vmul.f32 %v4171_v44, %v2467_v49  ;;  %v2618_v1 = vadd.f32 -1.0, %v3183_v63  ;;  %v2526_v45 = vsel %vm2498_vm2, %v2491_v3, 0.0 }
 0x19f   :  { %v3185_v39 = vpop.eup %3184  ;;  %v2470_v2 = vsel %vm2390_vm14, %v4162_v60, %v2619_v37 }
 0x1a0   :  { %2521 = vadd.xlane.f32.xlu1 %v2520_v26  ;;  %v2523_v25 = vsel %vm2498_vm2, %v2490_v14, 0.0  ;;  %v2469_v20 = vsel %vm2389_vm13, %v4166_v28, %v2618_v1  ;;  %v2621_v16 = vadd.f32 -1.0, %v3185_v39  ;;  %v2493_v30 = vmul.f32 %v4171_v44, %v2470_v2 }
 0x1a1   :  { %v3187_v62 = vpop.eup %3186  ;;  %2524 = vadd.xlane.f32.xlu0 %v2523_v25  ;;  %v2492_v23 = vmul.f32 %v4171_v44, %v2469_v20 }
 0x1a2   :  { %v2620_v48 = vadd.f32 -1.0, %v3187_v62  ;;  %v2472_v28 = vsel %vm2392_vm0, %v4180_v34, %v2621_v16  ;;  %v2532_v35 = vsel %vm2498_vm2, %v2493_v30, 0.0 }
 0x1a3   :  { %v2529_v7 = vsel %vm2498_vm2, %v2492_v23, 0.0  ;;  %v2495_v55 = vmul.f32 %v4171_v44, %v2472_v28 }
 0x1a4   :  { %v3189_v59 = vpop.eup %3188  ;;  %2527 = vadd.xlane.f32.xlu1 %v2526_v45  ;;  %v2471_v60 = vsel %vm2391_vm15, %v4186_v32, %v2620_v48 }
 0x1a5   :  { %v3191_v27 = vpop.eup %3190  ;;  %2530 = vadd.xlane.f32.xlu0 %v2529_v7  ;;  %v2494_v22 = vmul.f32 %v4171_v44, %v2471_v60  ;;  %v2623_v11 = vadd.f32 -1.0, %v3189_v59  ;;  %v2538_v31 = vsel %vm2498_vm2, %v2495_v55, 0.0 }
 0x1a6   :  { %v2622_v17 = vadd.f32 -1.0, %v3191_v27 }
 0x1a7   :  { %v2535_v18 = vsel %vm2498_vm2, %v2494_v22, 0.0  ;;  %v2474_v34 = vsel %vm2394_vm3, %v4196_v41, %v2623_v11 }
 0x1a8   :  { %2533 = vadd.xlane.f32.xlu1 %v2532_v35  ;;  %v2473_v32 = vsel %vm2393_vm1, %v4203_v47, %v2622_v17  ;;  %v2497_v0 = vmul.f32 %v4171_v44, %v2474_v34 }
 0x1a9   :  { %2536 = vadd.xlane.f32.xlu0 %v2535_v18  ;;  %v2496_v38 = vmul.f32 %v4171_v44, %v2473_v32 }
 0x1aa   :  { %v2544_v12 = vsel %vm2498_vm2, %v2497_v0, 0.0 }
 0x1ab   :  { %v2541_v6 = vsel %vm2498_vm2, %v2496_v38, 0.0  ;;  %vm2586_vm2 = vcmask 7168  }
 0x1ac   :  { %2539 = vadd.xlane.f32.xlu1 %v2538_v31 }
 0x1ad   :  { %2542 = vadd.xlane.f32.xlu0 %v2541_v6 }
 0x1b0   :  { %2545 = vadd.xlane.f32.xlu1 %v2544_v12 }
 0x219   :  { %v2504_v24 = vpop.xlane.xlu0 %2503 }
 0x21a   :  { %v2555_v47 = vadd.f32 %v4266_v42, %v2504_v24 }
 0x21c   :  { %3192 = vtanh.f32 %v2555_v47 }
 0x21d   :  { %v2510_v41 = vpop.xlane.xlu1 %2509 }
 0x21e   :  { %v2557_v19 = vadd.f32 %v4266_v42, %v2510_v41  ;;  %v2501_v51 = vpop.xlane.xlu0 %2500 }
 0x21f   :  { %v2554_v53 = vadd.f32 %v4266_v42, %v2501_v51 }
 0x220   :  { %3194 = vtanh.f32 %v2557_v19 }
 0x221   :  { %3196 = vtanh.f32 %v2554_v53  ;;  %v2507_v44 = vpop.xlane.xlu1 %2506 }
 0x222   :  { %v2556_v13 = vadd.f32 %v4266_v42, %v2507_v44  ;;  %v2513_v15 = vpop.xlane.xlu0 %2512 }
 0x223   :  { %v2558_v40 = vadd.f32 %v4266_v42, %v2513_v15 }
 0x224   :  { %3198 = vtanh.f32 %v2556_v13 }
 0x225   :  { %3200 = vtanh.f32 %v2558_v40  ;;  %v2516_v52 = vpop.xlane.xlu1 %2515 }
 0x226   :  { %v2559_v33 = vadd.f32 %v4266_v42, %v2516_v52  ;;  %v2519_v9 = vpop.xlane.xlu0 %2518 }
 0x227   :  { %v2560_v54 = vadd.f32 %v4266_v42, %v2519_v9 }
 0x228   :  { %3202 = vtanh.f32 %v2559_v33 }
 0x229   :  { %v3193_v5 = vpop.eup %3192  ;;  %3204 = vtanh.f32 %v2560_v54  ;;  %v2522_v8 = vpop.xlane.xlu1 %2521 }
 0x22a   :  { %2588 = vst.msk [vmem:[%s4355_s7 + $0x8] sm:$0xff] %vm2586_vm2, %v3193_v5  ;;  %v2561_v61 = vadd.f32 %v4266_v42, %v2522_v8  ;;  %v2525_v50 = vpop.xlane.xlu0 %2524 }
 0x22b   :  { %v2562_v29 = vadd.f32 %v4266_v42, %v2525_v50 }
 0x22c   :  { %3206 = vtanh.f32 %v2561_v61 }
 0x22d   :  { %v3195_v36 = vpop.eup %3194  ;;  %3208 = vtanh.f32 %v2562_v29  ;;  %v2528_v10 = vpop.xlane.xlu1 %2527 }
 0x22e   :  { %v3197_v57 = vpop.eup %3196  ;;  %2590 = vst.msk [vmem:[%s4355_s7 + $0x18] sm:$0xff] %vm2586_vm2, %v3195_v36  ;;  %v2563_v43 = vadd.f32 %v4266_v42, %v2528_v10  ;;  %v2531_v4 = vpop.xlane.xlu0 %2530 }
 0x22f   :  { %2587 = vst.msk [vmem:[%s4355_s7] sm:$0xff] %vm2586_vm2, %v3197_v57  ;;  %v2564_v21 = vadd.f32 %v4266_v42, %v2531_v4 }
 0x230   :  { %3210 = vtanh.f32 %v2563_v43 }
 0x231   :  { %v3199_v46 = vpop.eup %3198  ;;  %3212 = vtanh.f32 %v2564_v21  ;;  %v2534_v58 = vpop.xlane.xlu1 %2533 }
 0x232   :  { %v3201_v56 = vpop.eup %3200  ;;  %2589 = vst.msk [vmem:[%s4355_s7 + $0x10] sm:$0xff] %vm2586_vm2, %v3199_v46  ;;  %v2565_v63 = vadd.f32 %v4266_v42, %v2534_v58  ;;  %v2537_v49 = vpop.xlane.xlu0 %2536 }
 0x233   :  { %2591 = vst.msk [vmem:[%s4355_s7 + $0x20] sm:$0xff] %vm2586_vm2, %v3201_v56  ;;  %v2566_v37 = vadd.f32 %v4266_v42, %v2537_v49 }
 0x234   :  { %3214 = vtanh.f32 %v2565_v63 }
 0x235   :  { %v3203_v14 = vpop.eup %3202  ;;  %3216 = vtanh.f32 %v2566_v37  ;;  %v2540_v1 = vpop.xlane.xlu1 %2539 }
 0x236   :  { %v3205_v39 = vpop.eup %3204  ;;  %2592 = vst.msk [vmem:[%s4355_s7 + $0x28] sm:$0xff] %vm2586_vm2, %v3203_v14  ;;  %v2567_v26 = vadd.f32 %v4266_v42, %v2540_v1  ;;  %v2543_v3 = vpop.xlane.xlu0 %2542 }
 0x237   :  { %2593 = vst.msk [vmem:[%s4355_s7 + $0x30] sm:$0xff] %vm2586_vm2, %v3205_v39  ;;  %v2568_v25 = vadd.f32 %v4266_v42, %v2543_v3 }
 0x238   :  { %3218 = vtanh.f32 %v2567_v26 }
 0x239   :  { %v3207_v20 = vpop.eup %3206  ;;  %3220 = vtanh.f32 %v2568_v25  ;;  %v2546_v2 = vpop.xlane.xlu1 %2545 }
 0x23a   :  { %v3209_v16 = vpop.eup %3208  ;;  %2594 = vst.msk [vmem:[%s4355_s7 + $0x38] sm:$0xff] %vm2586_vm2, %v3207_v20  ;;  %v2569_v62 = vadd.f32 %v4266_v42, %v2546_v2 }
 0x23b   :  { %2595 = vst.msk [vmem:[%s4355_s7 + $0x40] sm:$0xff] %vm2586_vm2, %v3209_v16 }
 0x23c   :  { %3222 = vtanh.f32 %v2569_v62 }
 0x23d   :  { %v3211_v23 = vpop.eup %3210 }
 0x23e   :  { %v3213_v48 = vpop.eup %3212  ;;  %2596 = vst.msk [vmem:[%s4355_s7 + $0x48] sm:$0xff] %vm2586_vm2, %v3211_v23 }
 0x23f   :  { %2597 = vst.msk [vmem:[%s4355_s7 + $0x50] sm:$0xff] %vm2586_vm2, %v3213_v48 }
 0x241   :  { %v3215_v45 = vpop.eup %3214 }
 0x242   :  { %v3217_v7 = vpop.eup %3216  ;;  %2598 = vst.msk [vmem:[%s4355_s7 + $0x58] sm:$0xff] %vm2586_vm2, %v3215_v45 }
 0x243   :  { %2599 = vst.msk [vmem:[%s4355_s7 + $0x60] sm:$0xff] %vm2586_vm2, %v3217_v7 }
 0x245   :  { %v3219_v30 = vpop.eup %3218 }
 0x246   :  { %v3221_v59 = vpop.eup %3220  ;;  %2600 = vst.msk [vmem:[%s4355_s7 + $0x68] sm:$0xff] %vm2586_vm2, %v3219_v30 }
 0x247   :  { %2601 = vst.msk [vmem:[%s4355_s7 + $0x70] sm:$0xff] %vm2586_vm2, %v3221_v59 }
 0x249   :  { %v3223_v60 = vpop.eup %3222 }
 0x24a   :  { %2602 = vst.msk [vmem:[%s4355_s7 + $0x78] sm:$0xff] %vm2586_vm2, %v3223_v60 }

</bundles_post_ra>
